<compile_context>
chip_gen: v6e
topology: v6e:2x2x1
jax: 0.10.0
libtpu: 0.0.40
codegen_flags: <defaults>
</compile_context>

<pallas_src>
import math

import jax
import jax.numpy as jnp
from jax.experimental import pallas as pl
from jax.experimental.pallas import tpu as pltpu

LANE = 128          # lane width: grapher feature dims are zero-padded to this (exact math).
CPAD = 8            # channel-packed sublane pad for the conv path (>= IN_CH, == UNET_CH).

IN_CH = 3
UNET_CH = 8
EMBED_DIM = 32
PATCH = 4
NUM_CLASSES = 2

assert UNET_CH <= CPAD and IN_CH <= CPAD


# ---------------------------------------------------------------------------
# exact GELU (erf form, matches PyTorch nn.GELU default)
# ---------------------------------------------------------------------------

def _erf(z):
    # Abramowitz & Stegun 7.1.26, |err| < 1.5e-7 — built only from exp/abs/where/polys.
    a1, a2, a3, a4, a5, p = (0.254829592, -0.284496736, 1.421413741,
                             -1.453152027, 1.061405429, 0.3275911)
    s = jnp.where(z >= 0.0, 1.0, -1.0)
    a = jnp.abs(z)
    t = 1.0 / (1.0 + p * a)
    poly = ((((a5 * t + a4) * t + a3) * t + a2) * t + a1) * t
    return s * (1.0 - poly * jnp.exp(-a * a))


def _gelu_exact(x):
    return 0.5 * x * (1.0 + _erf(x * 0.7071067811865476))


# ---------------------------------------------------------------------------
# Kernel 1: fused ViGUNet gaze branch (3 convs + sigmoid gate), grid over batch
# ---------------------------------------------------------------------------

def _unet_gaze_gate(x_pk, tap_mask, p, H, W):
    """x_pk: [B, CPAD, H*W] bf16 (channel-packed, rows >= IN_CH are zero).
    tap_mask: [9*CPAD, H*W] f32 'same'-padding validity mask (tap-major rows).
    Returns gaze [B, CPAD, H*W] f32 (rows >= IN_CH zeroed) and the gaze-gated image
    xg [B, CPAD, H*W] bf16 that feeds the ViG stem."""
    B, CP, HW = x_pk.shape

    def kernel(x_ref, m_ref, w1_ref, b1_ref, w2_ref, b2_ref, wg_ref, bg_ref,
               gaze_ref, xg_ref):
        xf = x_ref[0].astype(jnp.float32)                    # (CPAD, HW)
        mask = m_ref[...]                                    # (9*CPAD, HW) f32

        def im2col(z):                                       # 9 XLU lane rolls + mask
            cols = []
            for di in range(3):
                for dj in range(3):
                    off = (di - 1) * W + (dj - 1)
                    shift = (-off) % HW
                    cols.append(z if shift == 0 else pltpu.roll(z, shift, axis=1))
            return (jnp.concatenate(cols, axis=0) * mask).astype(jnp.bfloat16)

        def conv(z, w_ref, b_ref):                           # ONE K=72 MXU matmul / conv
            return (jnp.dot(w_ref[...], im2col(z),
                            preferred_element_type=jnp.float32) + b_ref[...])

        h = jnp.maximum(conv(xf, w1_ref, b1_ref), 0.0)
        h = jnp.maximum(conv(h, w2_ref, b2_ref), 0.0)
        gaze = jax.nn.sigmoid(conv(h, wg_ref, bg_ref))
        # zero the padded output channels (sigmoid(0)=0.5 must not leak downstream)
        row = jax.lax.broadcasted_iota(jnp.int32, gaze.shape, 0)
        gaze_ref[0] = jnp.where(row < IN_CH, gaze, 0.0)
        # padded image rows are exactly zero -> gated padded rows stay exactly zero
        xg_ref[0] = (gaze * xf).astype(xg_ref.dtype)

    c2 = lambda shape: pl.BlockSpec(shape, lambda b: (0, 0))
    return pl.pallas_call(
        kernel,
        out_shape=(jax.ShapeDtypeStruct((B, CP, HW), jnp.float32),
                   jax.ShapeDtypeStruct((B, CP, HW), jnp.bfloat16)),
        grid=(B,),
        in_specs=[
            pl.BlockSpec((1, CP, HW), lambda b: (b, 0, 0)),
            c2((9 * CP, HW)),
            c2((CP, 9 * CP)), c2((CP, 1)),                   # conv1
            c2((CP, 9 * CP)), c2((CP, 1)),                   # conv2
            c2((CP, 9 * CP)), c2((CP, 1)),                   # gaze conv
        ],
        out_specs=(pl.BlockSpec((1, CP, HW), lambda b: (b, 0, 0)),
                   pl.BlockSpec((1, CP, HW), lambda b: (b, 0, 0))),
        compiler_params=pltpu.CompilerParams(dimension_semantics=("parallel",)),
    )(x_pk, tap_mask, p["u_w1"], p["u_b1"], p["u_w2"], p["u_b2"], p["u_wg"], p["u_bg"])


# ---------------------------------------------------------------------------
# Kernel 2: fused stem + grapher (max-relative) + FFN + mean-pool + head
# ---------------------------------------------------------------------------

def _vig_classifier(patches, p):
    """patches: [B, Nn, KP] bf16 with KP = PATCH*PATCH*CPAD = 128 (lane-dense stem K).
    Returns a lane-dense padded [B, 1, LANE] f32 logits block."""
    B, Nn, KP = patches.shape

    def kernel(p_ref, stem_w, stem_b, fc1_w, fc1_b, agg_w, agg_b, fc2_w, fc2_b,
               ffn_w1, ffn_b1, ffn_w2, ffn_b2, head_w, head_b, o_ref):
        def mm(a, w_ref, b_ref):
            return (jnp.dot(a.astype(jnp.bfloat16), w_ref[...],
                            preferred_element_type=jnp.float32) + b_ref[...])

        X = mm(p_ref[0], stem_w, stem_b)                     # (Nn, LANE) f32

        # grapher: fc1 -> max-relative aggregation (stacked K=256 weight) -> fc2 -> +X
        Y1 = mm(X, fc1_w, fc1_b)
        rel = jnp.max(Y1, axis=0, keepdims=True) - Y1        # XLU sublane reduce
        cat = jnp.concatenate([Y1.astype(jnp.bfloat16), rel.astype(jnp.bfloat16)],
                              axis=-1)                       # (Nn, 2*LANE) — VMEM concat
        A = _gelu_exact(jnp.dot(cat, agg_w[...],
                                preferred_element_type=jnp.float32) + agg_b[...])
        Y = mm(A, fc2_w, fc2_b) + X

        # FFN + residual
        Z = _gelu_exact(mm(Y, ffn_w1, ffn_b1))
        Z = mm(Z, ffn_w2, ffn_b2) + Y

        # global mean pool over nodes + classification head (lane-dense store)
        g = jnp.mean(Z, axis=0, keepdims=True)               # (1, LANE)
        o_ref[0] = mm(g, head_w, head_b)

    # TODO(synk): on v5e/v6e (single TC) all B batch elements could be processed in one
    #             grid step; grid=(B,) "parallel" is kept to feed both v7x TensorCores.
    c2 = lambda shape: pl.BlockSpec(shape, lambda b: (0, 0))
    return pl.pallas_call(
        kernel,
        out_shape=jax.ShapeDtypeStruct((B, 1, LANE), jnp.float32),
        grid=(B,),
        in_specs=[
            pl.BlockSpec((1, Nn, KP), lambda b: (b, 0, 0)),
            c2((KP, LANE)), c2((1, LANE)),                   # stem
            c2((LANE, LANE)), c2((1, LANE)),                 # fc1
            c2((2 * LANE, LANE)), c2((1, LANE)),             # agg (stacked W_a | W_b)
            c2((LANE, LANE)), c2((1, LANE)),                 # fc2
            c2((LANE, LANE)), c2((1, LANE)),                 # ffn1
            c2((LANE, LANE)), c2((1, LANE)),                 # ffn2
            c2((LANE, LANE)), c2((1, LANE)),                 # head
        ],
        out_specs=pl.BlockSpec((1, 1, LANE), lambda b: (b, 0, 0)),
        compiler_params=pltpu.CompilerParams(dimension_semantics=("parallel",)),
    )(patches,
      p["stem_w"], p["stem_b"],
      p["g_fc1_w"], p["g_fc1_b"], p["g_agg_w"], p["g_agg_b"],
      p["g_fc2_w"], p["g_fc2_b"],
      p["ffn_w1"], p["ffn_b1"], p["ffn_w2"], p["ffn_b2"],
      p["head_w"], p["head_b"])


# ---------------------------------------------------------------------------
# Static boundary mask for the in-kernel roll-based im2col ('same' 3x3 conv)
# ---------------------------------------------------------------------------

def _tap_mask(H, W):
    r = jnp.arange(H * W, dtype=jnp.int32) // W
    c = jnp.arange(H * W, dtype=jnp.int32) % W
    rows = []
    for di in range(3):
        for dj in range(3):
            ok = ((r + (di - 1) >= 0) & (r + (di - 1) < H) &
                  (c + (dj - 1) >= 0) & (c + (dj - 1) < W))
            rows.append(jnp.broadcast_to(ok[None, :].astype(jnp.float32), (CPAD, H * W)))
    return jnp.concatenate(rows, axis=0)                     # (9*CPAD, H*W), {0,1}


# ---------------------------------------------------------------------------
# Parameters (deterministic; pre-packed / zero-padded so all padding is exact)
# ---------------------------------------------------------------------------

def make_params(key=None):
    if key is None:
        key = jax.random.PRNGKey(0)
    keys = jax.random.split(key, 12)

    def lin(k, shape, fan_in):
        return jax.random.normal(k, shape, jnp.float32) / math.sqrt(fan_in)

    def conv_w_t(k, c_in, c_out):
        # transposed tap-major layout: (CPAD, 9*CPAD); column index = tap*CPAD + c_in
        w = lin(k, (9, c_in, c_out), 9 * c_in)
        wp = jnp.zeros((9, CPAD, CPAD), jnp.float32).at[:, :c_in, :c_out].set(w)
        return jnp.transpose(wp, (2, 0, 1)).reshape(CPAD, 9 * CPAD).astype(jnp.bfloat16)

    def pad_w(w, rows):
        out = jnp.zeros((rows, LANE), jnp.float32).at[:w.shape[0], :w.shape[1]].set(w)
        return out.astype(jnp.bfloat16)

    def zb(shape):
        return jnp.zeros(shape, jnp.float32)

    d = EMBED_DIM
    p = {}
    # --- ViGUNet gaze branch (reconstruction head omitted: discarded by GAViG.forward) ---
    p["u_w1"] = conv_w_t(keys[0], IN_CH, UNET_CH);   p["u_b1"] = zb((CPAD, 1))
    p["u_w2"] = conv_w_t(keys[1], UNET_CH, UNET_CH); p["u_b2"] = zb((CPAD, 1))
    p["u_wg"] = conv_w_t(keys[2], UNET_CH, IN_CH);   p["u_bg"] = zb((CPAD, 1))

    # --- ViG_Gaze patch-embed stem; row index = pi*(PATCH*CPAD) + pj*CPAD + c ---
    ws = lin(keys[3], (PATCH, PATCH, IN_CH, d), PATCH * PATCH * IN_CH)
    stem = jnp.zeros((PATCH, PATCH, CPAD, LANE), jnp.float32).at[:, :, :IN_CH, :d].set(ws)
    p["stem_w"] = stem.reshape(PATCH * PATCH * CPAD, LANE).astype(jnp.bfloat16)
    p["stem_b"] = zb((1, LANE))

    # --- grapher / FFN / head, zero-extended to LANE-dense shapes (exact) ---
    p["g_fc1_w"] = pad_w(lin(keys[4], (d, d), d), LANE);          p["g_fc1_b"] = zb((1, LANE))
    agg = jnp.zeros((2 * LANE, LANE), jnp.float32)
    agg = agg.at[:d, :d].set(lin(keys[5], (d, d), 2 * d))
    agg = agg.at[LANE:LANE + d, :d].set(lin(keys[6], (d, d), 2 * d))
    p["g_agg_w"] = agg.astype(jnp.bfloat16);                      p["g_agg_b"] = zb((1, LANE))
    p["g_fc2_w"] = pad_w(lin(keys[7], (d, d), d), LANE);          p["g_fc2_b"] = zb((1, LANE))
    p["ffn_w1"] = pad_w(lin(keys[8], (d, 4 * d), d), LANE);       p["ffn_b1"] = zb((1, LANE))
    p["ffn_w2"] = pad_w(lin(keys[9], (4 * d, d), 4 * d), LANE);   p["ffn_b2"] = zb((1, LANE))
    p["head_w"] = pad_w(lin(keys[10], (d, NUM_CLASSES), d), LANE); p["head_b"] = zb((1, LANE))
    return p


# ---------------------------------------------------------------------------
# GAViG forward (jit'ed)
# ---------------------------------------------------------------------------

@jax.jit
def gavig_forward(x_nchw, params):
    """x_nchw: [B, C, H, W] f32.  Returns (pred [B, NUM_CLASSES], gaze [B, C, H, W])."""
    B, C, H, W = x_nchw.shape
    HW = H * W
    # channel-packed layout: pixels on lanes; no 128-lane channel inflation in HBM
    x_pk = jnp.pad(x_nchw.reshape(B, C, HW), ((0, 0), (0, CPAD - C), (0, 0)))
    x_pk = x_pk.astype(jnp.bfloat16)
    mask = _tap_mask(H, W)                                   # static -> XLA constant

    # ----- ViGUNet: _, gaze = vigunet(x)  (recon head dropped: output unused) -----
    gaze_pk, xg_pk = _unet_gaze_gate(x_pk, mask, params, H, W)

    # ----- ViG_Gaze(torch.stack([x, gaze], 0)): gaze-modulated classifier -----
    # non-overlapping space-to-depth regroup (tiny XLA reshuffle between the two kernels)
    Ho, Wo = H // PATCH, W // PATCH
    patches = (xg_pk.reshape(B, CPAD, Ho, PATCH, Wo, PATCH)
               .transpose(0, 2, 4, 3, 5, 1)
               .reshape(B, Ho * Wo, PATCH * PATCH * CPAD))
    logits = _vig_classifier(patches, params)                # [B, 1, LANE]
    pred = logits[:, 0, :NUM_CLASSES]

    gaze = gaze_pk[:, :C, :].reshape(B, C, H, W)
    return pred, gaze


# ---------------------------------------------------------------------------
# Main
# ---------------------------------------------------------------------------

if __name__ == "__main__":
    B, C, H, W = 2, IN_CH, 16, 16
    x = jax.random.normal(jax.random.PRNGKey(0), (B, C, H, W), jnp.float32)
    params = make_params(jax.random.PRNGKey(0))

    pred, gaze = gavig_forward(x, params)
    pred = jax.block_until_ready(pred)
    gaze = jax.block_until_ready(gaze)

    assert pred.shape == (B, NUM_CLASSES)
    assert gaze.shape == (B, C, H, W)
    assert bool(jnp.all(jnp.isfinite(pred))) and bool(jnp.all(jnp.isfinite(gaze)))
    print("KERNEL_OK")
</pallas_src>

<mosaic_0001>
module attributes {stable_mosaic.version = 11 : i64} {
  func.func @kernel(%arg0: i32, %arg1: memref<1x8x256xbf16, #tpu.memory_space<vmem>>, %arg2: memref<72x256xf32, #tpu.memory_space<vmem>>, %arg3: memref<8x72xbf16, #tpu.memory_space<vmem>>, %arg4: memref<8x1xf32, #tpu.memory_space<vmem>>, %arg5: memref<8x72xbf16, #tpu.memory_space<vmem>>, %arg6: memref<8x1xf32, #tpu.memory_space<vmem>>, %arg7: memref<8x72xbf16, #tpu.memory_space<vmem>>, %arg8: memref<8x1xf32, #tpu.memory_space<vmem>>, %arg9: memref<1x8x256xf32, #tpu.memory_space<vmem>>, %arg10: memref<1x8x256xbf16, #tpu.memory_space<vmem>>) attributes {dimension_semantics = [#tpu.dimension_semantics<parallel>], iteration_bounds = array<i64: 2>, scalar_prefetch = 0 : i64, scratch_operands = 0 : i64, tpu.core_type = #tpu.core_type<tc>, window_params = [{transform_indices = @transform_0, window_bounds = array<i64: 1, 8, 256>}, {pipeline_mode = #tpu.pipeline_mode<synchronous>, transform_indices = @transform_1, window_bounds = array<i64: 72, 256>}, {pipeline_mode = #tpu.pipeline_mode<synchronous>, transform_indices = @transform_2, window_bounds = array<i64: 8, 72>}, {pipeline_mode = #tpu.pipeline_mode<synchronous>, transform_indices = @transform_3, window_bounds = array<i64: 8, 1>}, {pipeline_mode = #tpu.pipeline_mode<synchronous>, transform_indices = @transform_4, window_bounds = array<i64: 8, 72>}, {pipeline_mode = #tpu.pipeline_mode<synchronous>, transform_indices = @transform_5, window_bounds = array<i64: 8, 1>}, {pipeline_mode = #tpu.pipeline_mode<synchronous>, transform_indices = @transform_6, window_bounds = array<i64: 8, 72>}, {pipeline_mode = #tpu.pipeline_mode<synchronous>, transform_indices = @transform_7, window_bounds = array<i64: 8, 1>}, {transform_indices = @transform_8, window_bounds = array<i64: 1, 8, 256>}, {transform_indices = @transform_9, window_bounds = array<i64: 1, 8, 256>}]} {
    %c0 = arith.constant 0 : index
    %c0_0 = arith.constant 0 : index
    %c0_1 = arith.constant 0 : index
    %0 = vector.load %arg1[%c0, %c0_0, %c0_1] : memref<1x8x256xbf16, #tpu.memory_space<vmem>>, vector<1x8x256xbf16>
    %1 = vector.shape_cast %0 : vector<1x8x256xbf16> to vector<8x256xbf16>
    %2 = arith.extf %1 : vector<8x256xbf16> to vector<8x256xf32>
    %c0_2 = arith.constant 0 : index
    %c0_3 = arith.constant 0 : index
    %3 = vector.load %arg2[%c0_2, %c0_3] : memref<72x256xf32, #tpu.memory_space<vmem>>, vector<72x256xf32>
    %c0_4 = arith.constant 0 : index
    %c0_5 = arith.constant 0 : index
    %4 = vector.load %arg3[%c0_4, %c0_5] : memref<8x72xbf16, #tpu.memory_space<vmem>>, vector<8x72xbf16>
    %c17_i32 = arith.constant 17 : i32
    %5 = tpu.dynamic_rotate %2 by %c17_i32 dim 1 : vector<8x256xf32>, i32 -> vector<8x256xf32>
    %c16_i32 = arith.constant 16 : i32
    %6 = tpu.dynamic_rotate %2 by %c16_i32 dim 1 : vector<8x256xf32>, i32 -> vector<8x256xf32>
    %c15_i32 = arith.constant 15 : i32
    %7 = tpu.dynamic_rotate %2 by %c15_i32 dim 1 : vector<8x256xf32>, i32 -> vector<8x256xf32>
    %c1_i32 = arith.constant 1 : i32
    %8 = tpu.dynamic_rotate %2 by %c1_i32 dim 1 : vector<8x256xf32>, i32 -> vector<8x256xf32>
    %c255_i32 = arith.constant 255 : i32
    %9 = tpu.dynamic_rotate %2 by %c255_i32 dim 1 : vector<8x256xf32>, i32 -> vector<8x256xf32>
    %c241_i32 = arith.constant 241 : i32
    %10 = tpu.dynamic_rotate %2 by %c241_i32 dim 1 : vector<8x256xf32>, i32 -> vector<8x256xf32>
    %c240_i32 = arith.constant 240 : i32
    %11 = tpu.dynamic_rotate %2 by %c240_i32 dim 1 : vector<8x256xf32>, i32 -> vector<8x256xf32>
    %c239_i32 = arith.constant 239 : i32
    %12 = tpu.dynamic_rotate %2 by %c239_i32 dim 1 : vector<8x256xf32>, i32 -> vector<8x256xf32>
    %13 = tpu.concatenate %5, %6, %7, %8, %2, %9, %10, %11, %12 in 0 : vector<8x256xf32>, vector<8x256xf32>, vector<8x256xf32>, vector<8x256xf32>, vector<8x256xf32>, vector<8x256xf32>, vector<8x256xf32>, vector<8x256xf32>, vector<8x256xf32> -> vector<72x256xf32>
    %14 = arith.mulf %13, %3 : vector<72x256xf32>
    %15 = arith.truncf %14 : vector<72x256xf32> to vector<72x256xbf16>
    %cst = arith.constant dense<0.000000e+00> : vector<8x256xf32>
    %16 = tpu.matmul %4, %15, %cst {dimension_numbers = #tpu.dot_dimension_numbers<[1], [0], [0], [1], [0, 0, 1, 1], [], []>} : vector<8x72xbf16>, vector<72x256xbf16>, vector<8x256xf32> -> vector<8x256xf32>
    %c0_6 = arith.constant 0 : index
    %c0_7 = arith.constant 0 : index
    %17 = vector.load %arg4[%c0_6, %c0_7] : memref<8x1xf32, #tpu.memory_space<vmem>>, vector<8x1xf32>
    %18 = vector.broadcast %17 : vector<8x1xf32> to vector<8x256xf32>
    %19 = arith.addf %16, %18 : vector<8x256xf32>
    %cst_8 = arith.constant 0.000000e+00 : f32
    %20 = vector.broadcast %cst_8 : f32 to vector<8x256xf32>
    %21 = arith.maximumf %19, %20 : vector<8x256xf32>
    %c0_9 = arith.constant 0 : index
    %c0_10 = arith.constant 0 : index
    %22 = vector.load %arg5[%c0_9, %c0_10] : memref<8x72xbf16, #tpu.memory_space<vmem>>, vector<8x72xbf16>
    %c17_i32_11 = arith.constant 17 : i32
    %23 = tpu.dynamic_rotate %21 by %c17_i32_11 dim 1 : vector<8x256xf32>, i32 -> vector<8x256xf32>
    %c16_i32_12 = arith.constant 16 : i32
    %24 = tpu.dynamic_rotate %21 by %c16_i32_12 dim 1 : vector<8x256xf32>, i32 -> vector<8x256xf32>
    %c15_i32_13 = arith.constant 15 : i32
    %25 = tpu.dynamic_rotate %21 by %c15_i32_13 dim 1 : vector<8x256xf32>, i32 -> vector<8x256xf32>
    %c1_i32_14 = arith.constant 1 : i32
    %26 = tpu.dynamic_rotate %21 by %c1_i32_14 dim 1 : vector<8x256xf32>, i32 -> vector<8x256xf32>
    %c255_i32_15 = arith.constant 255 : i32
    %27 = tpu.dynamic_rotate %21 by %c255_i32_15 dim 1 : vector<8x256xf32>, i32 -> vector<8x256xf32>
    %c241_i32_16 = arith.constant 241 : i32
    %28 = tpu.dynamic_rotate %21 by %c241_i32_16 dim 1 : vector<8x256xf32>, i32 -> vector<8x256xf32>
    %c240_i32_17 = arith.constant 240 : i32
    %29 = tpu.dynamic_rotate %21 by %c240_i32_17 dim 1 : vector<8x256xf32>, i32 -> vector<8x256xf32>
    %c239_i32_18 = arith.constant 239 : i32
    %30 = tpu.dynamic_rotate %21 by %c239_i32_18 dim 1 : vector<8x256xf32>, i32 -> vector<8x256xf32>
    %31 = tpu.concatenate %23, %24, %25, %26, %21, %27, %28, %29, %30 in 0 : vector<8x256xf32>, vector<8x256xf32>, vector<8x256xf32>, vector<8x256xf32>, vector<8x256xf32>, vector<8x256xf32>, vector<8x256xf32>, vector<8x256xf32>, vector<8x256xf32> -> vector<72x256xf32>
    %32 = arith.mulf %31, %3 : vector<72x256xf32>
    %33 = arith.truncf %32 : vector<72x256xf32> to vector<72x256xbf16>
    %cst_19 = arith.constant dense<0.000000e+00> : vector<8x256xf32>
    %34 = tpu.matmul %22, %33, %cst_19 {dimension_numbers = #tpu.dot_dimension_numbers<[1], [0], [0], [1], [0, 0, 1, 1], [], []>} : vector<8x72xbf16>, vector<72x256xbf16>, vector<8x256xf32> -> vector<8x256xf32>
    %c0_20 = arith.constant 0 : index
    %c0_21 = arith.constant 0 : index
    %35 = vector.load %arg6[%c0_20, %c0_21] : memref<8x1xf32, #tpu.memory_space<vmem>>, vector<8x1xf32>
    %36 = vector.broadcast %35 : vector<8x1xf32> to vector<8x256xf32>
    %37 = arith.addf %34, %36 : vector<8x256xf32>
    %cst_22 = arith.constant 0.000000e+00 : f32
    %38 = vector.broadcast %cst_22 : f32 to vector<8x256xf32>
    %39 = arith.maximumf %37, %38 : vector<8x256xf32>
    %c0_23 = arith.constant 0 : index
    %c0_24 = arith.constant 0 : index
    %40 = vector.load %arg7[%c0_23, %c0_24] : memref<8x72xbf16, #tpu.memory_space<vmem>>, vector<8x72xbf16>
    %c17_i32_25 = arith.constant 17 : i32
    %41 = tpu.dynamic_rotate %39 by %c17_i32_25 dim 1 : vector<8x256xf32>, i32 -> vector<8x256xf32>
    %c16_i32_26 = arith.constant 16 : i32
    %42 = tpu.dynamic_rotate %39 by %c16_i32_26 dim 1 : vector<8x256xf32>, i32 -> vector<8x256xf32>
    %c15_i32_27 = arith.constant 15 : i32
    %43 = tpu.dynamic_rotate %39 by %c15_i32_27 dim 1 : vector<8x256xf32>, i32 -> vector<8x256xf32>
    %c1_i32_28 = arith.constant 1 : i32
    %44 = tpu.dynamic_rotate %39 by %c1_i32_28 dim 1 : vector<8x256xf32>, i32 -> vector<8x256xf32>
    %c255_i32_29 = arith.constant 255 : i32
    %45 = tpu.dynamic_rotate %39 by %c255_i32_29 dim 1 : vector<8x256xf32>, i32 -> vector<8x256xf32>
    %c241_i32_30 = arith.constant 241 : i32
    %46 = tpu.dynamic_rotate %39 by %c241_i32_30 dim 1 : vector<8x256xf32>, i32 -> vector<8x256xf32>
    %c240_i32_31 = arith.constant 240 : i32
    %47 = tpu.dynamic_rotate %39 by %c240_i32_31 dim 1 : vector<8x256xf32>, i32 -> vector<8x256xf32>
    %c239_i32_32 = arith.constant 239 : i32
    %48 = tpu.dynamic_rotate %39 by %c239_i32_32 dim 1 : vector<8x256xf32>, i32 -> vector<8x256xf32>
    %49 = tpu.concatenate %41, %42, %43, %44, %39, %45, %46, %47, %48 in 0 : vector<8x256xf32>, vector<8x256xf32>, vector<8x256xf32>, vector<8x256xf32>, vector<8x256xf32>, vector<8x256xf32>, vector<8x256xf32>, vector<8x256xf32>, vector<8x256xf32> -> vector<72x256xf32>
    %50 = arith.mulf %49, %3 : vector<72x256xf32>
    %51 = arith.truncf %50 : vector<72x256xf32> to vector<72x256xbf16>
    %cst_33 = arith.constant dense<0.000000e+00> : vector<8x256xf32>
    %52 = tpu.matmul %40, %51, %cst_33 {dimension_numbers = #tpu.dot_dimension_numbers<[1], [0], [0], [1], [0, 0, 1, 1], [], []>} : vector<8x72xbf16>, vector<72x256xbf16>, vector<8x256xf32> -> vector<8x256xf32>
    %c0_34 = arith.constant 0 : index
    %c0_35 = arith.constant 0 : index
    %53 = vector.load %arg8[%c0_34, %c0_35] : memref<8x1xf32, #tpu.memory_space<vmem>>, vector<8x1xf32>
    %54 = vector.broadcast %53 : vector<8x1xf32> to vector<8x256xf32>
    %55 = arith.addf %52, %54 : vector<8x256xf32>
    %56 = arith.negf %55 : vector<8x256xf32>
    %57 = math.exp %56 : vector<8x256xf32>
    %cst_36 = arith.constant 1.000000e+00 : f32
    %58 = vector.broadcast %cst_36 : f32 to vector<8x256xf32>
    %59 = arith.addf %58, %57 : vector<8x256xf32>
    %60 = arith.divf %58, %59 : vector<8x256xf32>
    %61 = tpu.iota {dimensions = array<i32: 0>} : vector<8x256xi32>
    %c3_i32 = arith.constant 3 : i32
    %62 = vector.broadcast %c3_i32 : i32 to vector<8x256xi32>
    %63 = arith.cmpi slt, %61, %62 : vector<8x256xi32>
    %cst_37 = arith.constant 0.000000e+00 : f32
    %64 = vector.broadcast %cst_37 : f32 to vector<8x256xf32>
    %65 = arith.select %63, %60, %64 : vector<8x256xi1>, vector<8x256xf32>
    %c0_38 = arith.constant 0 : index
    %c0_39 = arith.constant 0 : index
    %c0_40 = arith.constant 0 : index
    %66 = vector.load %arg9[%c0_38, %c0_39, %c0_40] : memref<1x8x256xf32, #tpu.memory_space<vmem>>, vector<1x8x256xf32>
    %67 = vector.shape_cast %66 : vector<1x8x256xf32> to vector<8x256xf32>
    %68 = vector.shape_cast %65 : vector<8x256xf32> to vector<1x8x256xf32>
    tpu.vector_store %arg9[%c0_38, %c0_39, %c0_40], %68 {strides = array<i32>} : memref<1x8x256xf32, #tpu.memory_space<vmem>>, vector<1x8x256xf32>,
    %69 = arith.mulf %60, %2 : vector<8x256xf32>
    %70 = arith.truncf %69 : vector<8x256xf32> to vector<8x256xbf16>
    %c0_41 = arith.constant 0 : index
    %c0_42 = arith.constant 0 : index
    %c0_43 = arith.constant 0 : index
    %71 = vector.load %arg10[%c0_41, %c0_42, %c0_43] : memref<1x8x256xbf16, #tpu.memory_space<vmem>>, vector<1x8x256xbf16>
    %72 = vector.shape_cast %71 : vector<1x8x256xbf16> to vector<8x256xbf16>
    %73 = vector.shape_cast %70 : vector<8x256xbf16> to vector<1x8x256xbf16>
    tpu.vector_store %arg10[%c0_41, %c0_42, %c0_43], %73 {strides = array<i32>} : memref<1x8x256xbf16, #tpu.memory_space<vmem>>, vector<1x8x256xbf16>,
    return
  }
  func.func @transform_0(%arg0: i32) -> (i32, i32, i32) {
    %c0_i32 = arith.constant 0 : i32
    %c0_i32_0 = arith.constant 0 : i32
    %c0_i32_1 = arith.constant 0 : i32
    return %arg0, %c0_i32, %c0_i32_0 : i32, i32, i32
  }
  func.func @transform_1(%arg0: i32) -> (i32, i32) {
    %c0_i32 = arith.constant 0 : i32
    %c0_i32_0 = arith.constant 0 : i32
    %c0_i32_1 = arith.constant 0 : i32
    return %c0_i32, %c0_i32_0 : i32, i32
  }
  func.func @transform_2(%arg0: i32) -> (i32, i32) {
    %c0_i32 = arith.constant 0 : i32
    %c0_i32_0 = arith.constant 0 : i32
    %c0_i32_1 = arith.constant 0 : i32
    return %c0_i32, %c0_i32_0 : i32, i32
  }
  func.func @transform_3(%arg0: i32) -> (i32, i32) {
    %c0_i32 = arith.constant 0 : i32
    %c0_i32_0 = arith.constant 0 : i32
    %c0_i32_1 = arith.constant 0 : i32
    return %c0_i32, %c0_i32_0 : i32, i32
  }
  func.func @transform_4(%arg0: i32) -> (i32, i32) {
    %c0_i32 = arith.constant 0 : i32
    %c0_i32_0 = arith.constant 0 : i32
    %c0_i32_1 = arith.constant 0 : i32
    return %c0_i32, %c0_i32_0 : i32, i32
  }
  func.func @transform_5(%arg0: i32) -> (i32, i32) {
    %c0_i32 = arith.constant 0 : i32
    %c0_i32_0 = arith.constant 0 : i32
    %c0_i32_1 = arith.constant 0 : i32
    return %c0_i32, %c0_i32_0 : i32, i32
  }
  func.func @transform_6(%arg0: i32) -> (i32, i32) {
    %c0_i32 = arith.constant 0 : i32
    %c0_i32_0 = arith.constant 0 : i32
    %c0_i32_1 = arith.constant 0 : i32
    return %c0_i32, %c0_i32_0 : i32, i32
  }
  func.func @transform_7(%arg0: i32) -> (i32, i32) {
    %c0_i32 = arith.constant 0 : i32
    %c0_i32_0 = arith.constant 0 : i32
    %c0_i32_1 = arith.constant 0 : i32
    return %c0_i32, %c0_i32_0 : i32, i32
  }
  func.func @transform_8(%arg0: i32) -> (i32, i32, i32) {
    %c0_i32 = arith.constant 0 : i32
    %c0_i32_0 = arith.constant 0 : i32
    %c0_i32_1 = arith.constant 0 : i32
    return %arg0, %c0_i32, %c0_i32_0 : i32, i32, i32
  }
  func.func @transform_9(%arg0: i32) -> (i32, i32, i32) {
    %c0_i32 = arith.constant 0 : i32
    %c0_i32_0 = arith.constant 0 : i32
    %c0_i32_1 = arith.constant 0 : i32
    return %arg0, %c0_i32, %c0_i32_0 : i32, i32, i32
  }
}

module attributes {stable_mosaic.version = 11 : i64} {
  func.func @kernel(%arg0: i32, %arg1: memref<1x16x128xbf16, #tpu.memory_space<vmem>>, %arg2: memref<128x128xbf16, #tpu.memory_space<vmem>>, %arg3: memref<1x128xf32, #tpu.memory_space<vmem>>, %arg4: memref<128x128xbf16, #tpu.memory_space<vmem>>, %arg5: memref<1x128xf32, #tpu.memory_space<vmem>>, %arg6: memref<256x128xbf16, #tpu.memory_space<vmem>>, %arg7: memref<1x128xf32, #tpu.memory_space<vmem>>, %arg8: memref<128x128xbf16, #tpu.memory_space<vmem>>, %arg9: memref<1x128xf32, #tpu.memory_space<vmem>>, %arg10: memref<128x128xbf16, #tpu.memory_space<vmem>>, %arg11: memref<1x128xf32, #tpu.memory_space<vmem>>, %arg12: memref<128x128xbf16, #tpu.memory_space<vmem>>, %arg13: memref<1x128xf32, #tpu.memory_space<vmem>>, %arg14: memref<128x128xbf16, #tpu.memory_space<vmem>>, %arg15: memref<1x128xf32, #tpu.memory_space<vmem>>, %arg16: memref<1x1x128xf32, #tpu.memory_space<vmem>>) attributes {dimension_semantics = [#tpu.dimension_semantics<parallel>], iteration_bounds = array<i64: 2>, scalar_prefetch = 0 : i64, scratch_operands = 0 : i64, tpu.core_type = #tpu.core_type<tc>, window_params = [{transform_indices = @transform_0, window_bounds = array<i64: 1, 16, 128>}, {pipeline_mode = #tpu.pipeline_mode<synchronous>, transform_indices = @transform_1, window_bounds = array<i64: 128, 128>}, {pipeline_mode = #tpu.pipeline_mode<synchronous>, transform_indices = @transform_2, window_bounds = array<i64: 1, 128>}, {pipeline_mode = #tpu.pipeline_mode<synchronous>, transform_indices = @transform_3, window_bounds = array<i64: 128, 128>}, {pipeline_mode = #tpu.pipeline_mode<synchronous>, transform_indices = @transform_4, window_bounds = array<i64: 1, 128>}, {pipeline_mode = #tpu.pipeline_mode<synchronous>, transform_indices = @transform_5, window_bounds = array<i64: 256, 128>}, {pipeline_mode = #tpu.pipeline_mode<synchronous>, transform_indices = @transform_6, window_bounds = array<i64: 1, 128>}, {pipeline_mode = #tpu.pipeline_mode<synchronous>, transform_indices = @transform_7, window_bounds = array<i64: 128, 128>}, {pipeline_mode = #tpu.pipeline_mode<synchronous>, transform_indices = @transform_8, window_bounds = array<i64: 1, 128>}, {pipeline_mode = #tpu.pipeline_mode<synchronous>, transform_indices = @transform_9, window_bounds = array<i64: 128, 128>}, {pipeline_mode = #tpu.pipeline_mode<synchronous>, transform_indices = @transform_10, window_bounds = array<i64: 1, 128>}, {pipeline_mode = #tpu.pipeline_mode<synchronous>, transform_indices = @transform_11, window_bounds = array<i64: 128, 128>}, {pipeline_mode = #tpu.pipeline_mode<synchronous>, transform_indices = @transform_12, window_bounds = array<i64: 1, 128>}, {pipeline_mode = #tpu.pipeline_mode<synchronous>, transform_indices = @transform_13, window_bounds = array<i64: 128, 128>}, {pipeline_mode = #tpu.pipeline_mode<synchronous>, transform_indices = @transform_14, window_bounds = array<i64: 1, 128>}, {transform_indices = @transform_15, window_bounds = array<i64: 1, 1, 128>}]} {
    %c0 = arith.constant 0 : index
    %c0_0 = arith.constant 0 : index
    %c0_1 = arith.constant 0 : index
    %0 = vector.load %arg1[%c0, %c0_0, %c0_1] : memref<1x16x128xbf16, #tpu.memory_space<vmem>>, vector<1x16x128xbf16>
    %1 = vector.shape_cast %0 : vector<1x16x128xbf16> to vector<16x128xbf16>
    %c0_2 = arith.constant 0 : index
    %c0_3 = arith.constant 0 : index
    %2 = vector.load %arg2[%c0_2, %c0_3] : memref<128x128xbf16, #tpu.memory_space<vmem>>, vector<128x128xbf16>
    %cst = arith.constant dense<0.000000e+00> : vector<16x128xf32>
    %3 = tpu.matmul %1, %2, %cst {dimension_numbers = #tpu.dot_dimension_numbers<[1], [0], [0], [1], [0, 0, 1, 1], [], []>} : vector<16x128xbf16>, vector<128x128xbf16>, vector<16x128xf32> -> vector<16x128xf32>
    %c0_4 = arith.constant 0 : index
    %c0_5 = arith.constant 0 : index
    %4 = vector.load %arg3[%c0_4, %c0_5] : memref<1x128xf32, #tpu.memory_space<vmem>>, vector<1x128xf32>
    %5 = vector.broadcast %4 : vector<1x128xf32> to vector<16x128xf32>
    %6 = arith.addf %3, %5 : vector<16x128xf32>
    %7 = arith.truncf %6 : vector<16x128xf32> to vector<16x128xbf16>
    %c0_6 = arith.constant 0 : index
    %c0_7 = arith.constant 0 : index
    %8 = vector.load %arg4[%c0_6, %c0_7] : memref<128x128xbf16, #tpu.memory_space<vmem>>, vector<128x128xbf16>
    %cst_8 = arith.constant dense<0.000000e+00> : vector<16x128xf32>
    %9 = tpu.matmul %7, %8, %cst_8 {dimension_numbers = #tpu.dot_dimension_numbers<[1], [0], [0], [1], [0, 0, 1, 1], [], []>} : vector<16x128xbf16>, vector<128x128xbf16>, vector<16x128xf32> -> vector<16x128xf32>
    %c0_9 = arith.constant 0 : index
    %c0_10 = arith.constant 0 : index
    %10 = vector.load %arg5[%c0_9, %c0_10] : memref<1x128xf32, #tpu.memory_space<vmem>>, vector<1x128xf32>
    %11 = vector.broadcast %10 : vector<1x128xf32> to vector<16x128xf32>
    %12 = arith.addf %9, %11 : vector<16x128xf32>
    %cst_11 = arith.constant dense<0xFF800000> : vector<128xf32>
    %13 = vector.multi_reduction <maximumf>, %12, %cst_11 [0] : vector<16x128xf32> to vector<128xf32>
    %14 = vector.shape_cast %13 : vector<128xf32> to vector<1x128xf32>
    %15 = vector.broadcast %14 : vector<1x128xf32> to vector<16x128xf32>
    %16 = arith.subf %15, %12 : vector<16x128xf32>
    %17 = arith.truncf %12 : vector<16x128xf32> to vector<16x128xbf16>
    %18 = arith.truncf %16 : vector<16x128xf32> to vector<16x128xbf16>
    %19 = tpu.concatenate %17, %18 in 1 : vector<16x128xbf16>, vector<16x128xbf16> -> vector<16x256xbf16>
    %c0_12 = arith.constant 0 : index
    %c0_13 = arith.constant 0 : index
    %20 = vector.load %arg6[%c0_12, %c0_13] : memref<256x128xbf16, #tpu.memory_space<vmem>>, vector<256x128xbf16>
    %cst_14 = arith.constant dense<0.000000e+00> : vector<16x128xf32>
    %21 = tpu.matmul %19, %20, %cst_14 {dimension_numbers = #tpu.dot_dimension_numbers<[1], [0], [0], [1], [0, 0, 1, 1], [], []>} : vector<16x256xbf16>, vector<256x128xbf16>, vector<16x128xf32> -> vector<16x128xf32>
    %c0_15 = arith.constant 0 : index
    %c0_16 = arith.constant 0 : index
    %22 = vector.load %arg7[%c0_15, %c0_16] : memref<1x128xf32, #tpu.memory_space<vmem>>, vector<1x128xf32>
    %23 = vector.broadcast %22 : vector<1x128xf32> to vector<16x128xf32>
    %24 = arith.addf %21, %23 : vector<16x128xf32>
    %cst_17 = arith.constant 5.000000e-01 : f32
    %25 = vector.broadcast %cst_17 : f32 to vector<16x128xf32>
    %26 = arith.mulf %25, %24 : vector<16x128xf32>
    %cst_18 = arith.constant 0.707106769 : f32
    %27 = vector.broadcast %cst_18 : f32 to vector<16x128xf32>
    %28 = arith.mulf %24, %27 : vector<16x128xf32>
    %cst_19 = arith.constant 0.000000e+00 : f32
    %29 = vector.broadcast %cst_19 : f32 to vector<16x128xf32>
    %30 = arith.cmpf oge, %28, %29 : vector<16x128xf32>
    %cst_20 = arith.constant 1.000000e+00 : f32
    %cst_21 = arith.constant -1.000000e+00 : f32
    %31 = vector.broadcast %cst_20 : f32 to vector<16x128xf32>
    %32 = vector.broadcast %cst_21 : f32 to vector<16x128xf32>
    %33 = arith.select %30, %31, %32 : vector<16x128xi1>, vector<16x128xf32>
    %34 = math.absf %28 : vector<16x128xf32>
    %cst_22 = arith.constant 0.327591091 : f32
    %35 = vector.broadcast %cst_22 : f32 to vector<16x128xf32>
    %36 = arith.mulf %35, %34 : vector<16x128xf32>
    %cst_23 = arith.constant 1.000000e+00 : f32
    %37 = vector.broadcast %cst_23 : f32 to vector<16x128xf32>
    %38 = arith.addf %37, %36 : vector<16x128xf32>
    %cst_24 = arith.constant 1.000000e+00 : f32
    %39 = vector.broadcast %cst_24 : f32 to vector<16x128xf32>
    %40 = arith.divf %39, %38 : vector<16x128xf32>
    %cst_25 = arith.constant 1.06140542 : f32
    %41 = vector.broadcast %cst_25 : f32 to vector<16x128xf32>
    %42 = arith.mulf %41, %40 : vector<16x128xf32>
    %cst_26 = arith.constant -1.45315206 : f32
    %43 = vector.broadcast %cst_26 : f32 to vector<16x128xf32>
    %44 = arith.addf %42, %43 : vector<16x128xf32>
    %45 = arith.mulf %44, %40 : vector<16x128xf32>
    %cst_27 = arith.constant 1.42141378 : f32
    %46 = vector.broadcast %cst_27 : f32 to vector<16x128xf32>
    %47 = arith.addf %45, %46 : vector<16x128xf32>
    %48 = arith.mulf %47, %40 : vector<16x128xf32>
    %cst_28 = arith.constant -0.284496725 : f32
    %49 = vector.broadcast %cst_28 : f32 to vector<16x128xf32>
    %50 = arith.addf %48, %49 : vector<16x128xf32>
    %51 = arith.mulf %50, %40 : vector<16x128xf32>
    %cst_29 = arith.constant 0.254829586 : f32
    %52 = vector.broadcast %cst_29 : f32 to vector<16x128xf32>
    %53 = arith.addf %51, %52 : vector<16x128xf32>
    %54 = arith.mulf %53, %40 : vector<16x128xf32>
    %cst_30 = arith.constant 0.000000e+00 : f32
    %55 = vector.broadcast %cst_30 : f32 to vector<16x128xf32>
    %56 = arith.subf %55, %34 : vector<16x128xf32>
    %57 = arith.mulf %56, %34 : vector<16x128xf32>
    %58 = math.exp %57 : vector<16x128xf32>
    %59 = arith.mulf %54, %58 : vector<16x128xf32>
    %cst_31 = arith.constant 1.000000e+00 : f32
    %60 = vector.broadcast %cst_31 : f32 to vector<16x128xf32>
    %61 = arith.subf %60, %59 : vector<16x128xf32>
    %62 = arith.mulf %33, %61 : vector<16x128xf32>
    %cst_32 = arith.constant 1.000000e+00 : f32
    %63 = vector.broadcast %cst_32 : f32 to vector<16x128xf32>
    %64 = arith.addf %63, %62 : vector<16x128xf32>
    %65 = arith.mulf %26, %64 : vector<16x128xf32>
    %66 = arith.truncf %65 : vector<16x128xf32> to vector<16x128xbf16>
    %c0_33 = arith.constant 0 : index
    %c0_34 = arith.constant 0 : index
    %67 = vector.load %arg8[%c0_33, %c0_34] : memref<128x128xbf16, #tpu.memory_space<vmem>>, vector<128x128xbf16>
    %cst_35 = arith.constant dense<0.000000e+00> : vector<16x128xf32>
    %68 = tpu.matmul %66, %67, %cst_35 {dimension_numbers = #tpu.dot_dimension_numbers<[1], [0], [0], [1], [0, 0, 1, 1], [], []>} : vector<16x128xbf16>, vector<128x128xbf16>, vector<16x128xf32> -> vector<16x128xf32>
    %c0_36 = arith.constant 0 : index
    %c0_37 = arith.constant 0 : index
    %69 = vector.load %arg9[%c0_36, %c0_37] : memref<1x128xf32, #tpu.memory_space<vmem>>, vector<1x128xf32>
    %70 = vector.broadcast %69 : vector<1x128xf32> to vector<16x128xf32>
    %71 = arith.addf %68, %70 : vector<16x128xf32>
    %72 = arith.addf %71, %6 : vector<16x128xf32>
    %73 = arith.truncf %72 : vector<16x128xf32> to vector<16x128xbf16>
    %c0_38 = arith.constant 0 : index
    %c0_39 = arith.constant 0 : index
    %74 = vector.load %arg10[%c0_38, %c0_39] : memref<128x128xbf16, #tpu.memory_space<vmem>>, vector<128x128xbf16>
    %cst_40 = arith.constant dense<0.000000e+00> : vector<16x128xf32>
    %75 = tpu.matmul %73, %74, %cst_40 {dimension_numbers = #tpu.dot_dimension_numbers<[1], [0], [0], [1], [0, 0, 1, 1], [], []>} : vector<16x128xbf16>, vector<128x128xbf16>, vector<16x128xf32> -> vector<16x128xf32>
    %c0_41 = arith.constant 0 : index
    %c0_42 = arith.constant 0 : index
    %76 = vector.load %arg11[%c0_41, %c0_42] : memref<1x128xf32, #tpu.memory_space<vmem>>, vector<1x128xf32>
    %77 = vector.broadcast %76 : vector<1x128xf32> to vector<16x128xf32>
    %78 = arith.addf %75, %77 : vector<16x128xf32>
    %cst_43 = arith.constant 5.000000e-01 : f32
    %79 = vector.broadcast %cst_43 : f32 to vector<16x128xf32>
    %80 = arith.mulf %79, %78 : vector<16x128xf32>
    %cst_44 = arith.constant 0.707106769 : f32
    %81 = vector.broadcast %cst_44 : f32 to vector<16x128xf32>
    %82 = arith.mulf %78, %81 : vector<16x128xf32>
    %cst_45 = arith.constant 0.000000e+00 : f32
    %83 = vector.broadcast %cst_45 : f32 to vector<16x128xf32>
    %84 = arith.cmpf oge, %82, %83 : vector<16x128xf32>
    %cst_46 = arith.constant 1.000000e+00 : f32
    %cst_47 = arith.constant -1.000000e+00 : f32
    %85 = vector.broadcast %cst_46 : f32 to vector<16x128xf32>
    %86 = vector.broadcast %cst_47 : f32 to vector<16x128xf32>
    %87 = arith.select %84, %85, %86 : vector<16x128xi1>, vector<16x128xf32>
    %88 = math.absf %82 : vector<16x128xf32>
    %cst_48 = arith.constant 0.327591091 : f32
    %89 = vector.broadcast %cst_48 : f32 to vector<16x128xf32>
    %90 = arith.mulf %89, %88 : vector<16x128xf32>
    %cst_49 = arith.constant 1.000000e+00 : f32
    %91 = vector.broadcast %cst_49 : f32 to vector<16x128xf32>
    %92 = arith.addf %91, %90 : vector<16x128xf32>
    %cst_50 = arith.constant 1.000000e+00 : f32
    %93 = vector.broadcast %cst_50 : f32 to vector<16x128xf32>
    %94 = arith.divf %93, %92 : vector<16x128xf32>
    %cst_51 = arith.constant 1.06140542 : f32
    %95 = vector.broadcast %cst_51 : f32 to vector<16x128xf32>
    %96 = arith.mulf %95, %94 : vector<16x128xf32>
    %cst_52 = arith.constant -1.45315206 : f32
    %97 = vector.broadcast %cst_52 : f32 to vector<16x128xf32>
    %98 = arith.addf %96, %97 : vector<16x128xf32>
    %99 = arith.mulf %98, %94 : vector<16x128xf32>
    %cst_53 = arith.constant 1.42141378 : f32
    %100 = vector.broadcast %cst_53 : f32 to vector<16x128xf32>
    %101 = arith.addf %99, %100 : vector<16x128xf32>
    %102 = arith.mulf %101, %94 : vector<16x128xf32>
    %cst_54 = arith.constant -0.284496725 : f32
    %103 = vector.broadcast %cst_54 : f32 to vector<16x128xf32>
    %104 = arith.addf %102, %103 : vector<16x128xf32>
    %105 = arith.mulf %104, %94 : vector<16x128xf32>
    %cst_55 = arith.constant 0.254829586 : f32
    %106 = vector.broadcast %cst_55 : f32 to vector<16x128xf32>
    %107 = arith.addf %105, %106 : vector<16x128xf32>
    %108 = arith.mulf %107, %94 : vector<16x128xf32>
    %cst_56 = arith.constant 0.000000e+00 : f32
    %109 = vector.broadcast %cst_56 : f32 to vector<16x128xf32>
    %110 = arith.subf %109, %88 : vector<16x128xf32>
    %111 = arith.mulf %110, %88 : vector<16x128xf32>
    %112 = math.exp %111 : vector<16x128xf32>
    %113 = arith.mulf %108, %112 : vector<16x128xf32>
    %cst_57 = arith.constant 1.000000e+00 : f32
    %114 = vector.broadcast %cst_57 : f32 to vector<16x128xf32>
    %115 = arith.subf %114, %113 : vector<16x128xf32>
    %116 = arith.mulf %87, %115 : vector<16x128xf32>
    %cst_58 = arith.constant 1.000000e+00 : f32
    %117 = vector.broadcast %cst_58 : f32 to vector<16x128xf32>
    %118 = arith.addf %117, %116 : vector<16x128xf32>
    %119 = arith.mulf %80, %118 : vector<16x128xf32>
    %120 = arith.truncf %119 : vector<16x128xf32> to vector<16x128xbf16>
    %c0_59 = arith.constant 0 : index
    %c0_60 = arith.constant 0 : index
    %121 = vector.load %arg12[%c0_59, %c0_60] : memref<128x128xbf16, #tpu.memory_space<vmem>>, vector<128x128xbf16>
    %cst_61 = arith.constant dense<0.000000e+00> : vector<16x128xf32>
    %122 = tpu.matmul %120, %121, %cst_61 {dimension_numbers = #tpu.dot_dimension_numbers<[1], [0], [0], [1], [0, 0, 1, 1], [], []>} : vector<16x128xbf16>, vector<128x128xbf16>, vector<16x128xf32> -> vector<16x128xf32>
    %c0_62 = arith.constant 0 : index
    %c0_63 = arith.constant 0 : index
    %123 = vector.load %arg13[%c0_62, %c0_63] : memref<1x128xf32, #tpu.memory_space<vmem>>, vector<1x128xf32>
    %124 = vector.broadcast %123 : vector<1x128xf32> to vector<16x128xf32>
    %125 = arith.addf %122, %124 : vector<16x128xf32>
    %126 = arith.addf %125, %72 : vector<16x128xf32>
    %cst_64 = arith.constant dense<0.000000e+00> : vector<128xf32>
    %127 = vector.multi_reduction <add>, %126, %cst_64 [0] : vector<16x128xf32> to vector<128xf32>
    %128 = vector.shape_cast %127 : vector<128xf32> to vector<1x128xf32>
    %cst_65 = arith.constant 1.600000e+01 : f32
    %129 = vector.broadcast %cst_65 : f32 to vector<1x128xf32>
    %130 = arith.divf %128, %129 : vector<1x128xf32>
    %131 = arith.truncf %130 : vector<1x128xf32> to vector<1x128xbf16>
    %c0_66 = arith.constant 0 : index
    %c0_67 = arith.constant 0 : index
    %132 = vector.load %arg14[%c0_66, %c0_67] : memref<128x128xbf16, #tpu.memory_space<vmem>>, vector<128x128xbf16>
    %cst_68 = arith.constant dense<0.000000e+00> : vector<1x128xf32>
    %133 = tpu.matmul %131, %132, %cst_68 {dimension_numbers = #tpu.dot_dimension_numbers<[1], [0], [0], [1], [0, 0, 1, 1], [], []>} : vector<1x128xbf16>, vector<128x128xbf16>, vector<1x128xf32> -> vector<1x128xf32>
    %c0_69 = arith.constant 0 : index
    %c0_70 = arith.constant 0 : index
    %134 = vector.load %arg15[%c0_69, %c0_70] : memref<1x128xf32, #tpu.memory_space<vmem>>, vector<1x128xf32>
    %135 = arith.addf %133, %134 : vector<1x128xf32>
    %c0_71 = arith.constant 0 : index
    %c0_72 = arith.constant 0 : index
    %c0_73 = arith.constant 0 : index
    %136 = vector.load %arg16[%c0_71, %c0_72, %c0_73] : memref<1x1x128xf32, #tpu.memory_space<vmem>>, vector<1x1x128xf32>
    %137 = vector.shape_cast %136 : vector<1x1x128xf32> to vector<1x128xf32>
    %138 = vector.shape_cast %135 : vector<1x128xf32> to vector<1x1x128xf32>
    tpu.vector_store %arg16[%c0_71, %c0_72, %c0_73], %138 {strides = array<i32>} : memref<1x1x128xf32, #tpu.memory_space<vmem>>, vector<1x1x128xf32>,
    return
  }
  func.func @transform_0(%arg0: i32) -> (i32, i32, i32) {
    %c0_i32 = arith.constant 0 : i32
    %c0_i32_0 = arith.constant 0 : i32
    %c0_i32_1 = arith.constant 0 : i32
    return %arg0, %c0_i32, %c0_i32_0 : i32, i32, i32
  }
  func.func @transform_1(%arg0: i32) -> (i32, i32) {
    %c0_i32 = arith.constant 0 : i32
    %c0_i32_0 = arith.constant 0 : i32
    %c0_i32_1 = arith.constant 0 : i32
    return %c0_i32, %c0_i32_0 : i32, i32
  }
  func.func @transform_2(%arg0: i32) -> (i32, i32) {
    %c0_i32 = arith.constant 0 : i32
    %c0_i32_0 = arith.constant 0 : i32
    %c0_i32_1 = arith.constant 0 : i32
    return %c0_i32, %c0_i32_0 : i32, i32
  }
  func.func @transform_3(%arg0: i32) -> (i32, i32) {
    %c0_i32 = arith.constant 0 : i32
    %c0_i32_0 = arith.constant 0 : i32
    %c0_i32_1 = arith.constant 0 : i32
    return %c0_i32, %c0_i32_0 : i32, i32
  }
  func.func @transform_4(%arg0: i32) -> (i32, i32) {
    %c0_i32 = arith.constant 0 : i32
    %c0_i32_0 = arith.constant 0 : i32
    %c0_i32_1 = arith.constant 0 : i32
    return %c0_i32, %c0_i32_0 : i32, i32
  }
  func.func @transform_5(%arg0: i32) -> (i32, i32) {
    %c0_i32 = arith.constant 0 : i32
    %c0_i32_0 = arith.constant 0 : i32
    %c0_i32_1 = arith.constant 0 : i32
    return %c0_i32, %c0_i32_0 : i32, i32
  }
  func.func @transform_6(%arg0: i32) -> (i32, i32) {
    %c0_i32 = arith.constant 0 : i32
    %c0_i32_0 = arith.constant 0 : i32
    %c0_i32_1 = arith.constant 0 : i32
    return %c0_i32, %c0_i32_0 : i32, i32
  }
  func.func @transform_7(%arg0: i32) -> (i32, i32) {
    %c0_i32 = arith.constant 0 : i32
    %c0_i32_0 = arith.constant 0 : i32
    %c0_i32_1 = arith.constant 0 : i32
    return %c0_i32, %c0_i32_0 : i32, i32
  }
  func.func @transform_8(%arg0: i32) -> (i32, i32) {
    %c0_i32 = arith.constant 0 : i32
    %c0_i32_0 = arith.constant 0 : i32
    %c0_i32_1 = arith.constant 0 : i32
    return %c0_i32, %c0_i32_0 : i32, i32
  }
  func.func @transform_9(%arg0: i32) -> (i32, i32) {
    %c0_i32 = arith.constant 0 : i32
    %c0_i32_0 = arith.constant 0 : i32
    %c0_i32_1 = arith.constant 0 : i32
    return %c0_i32, %c0_i32_0 : i32, i32
  }
  func.func @transform_10(%arg0: i32) -> (i32, i32) {
    %c0_i32 = arith.constant 0 : i32
    %c0_i32_0 = arith.constant 0 : i32
    %c0_i32_1 = arith.constant 0 : i32
    return %c0_i32, %c0_i32_0 : i32, i32
  }
  func.func @transform_11(%arg0: i32) -> (i32, i32) {
    %c0_i32 = arith.constant 0 : i32
    %c0_i32_0 = arith.constant 0 : i32
    %c0_i32_1 = arith.constant 0 : i32
    return %c0_i32, %c0_i32_0 : i32, i32
  }
  func.func @transform_12(%arg0: i32) -> (i32, i32) {
    %c0_i32 = arith.constant 0 : i32
    %c0_i32_0 = arith.constant 0 : i32
    %c0_i32_1 = arith.constant 0 : i32
    return %c0_i32, %c0_i32_0 : i32, i32
  }
  func.func @transform_13(%arg0: i32) -> (i32, i32) {
    %c0_i32 = arith.constant 0 : i32
    %c0_i32_0 = arith.constant 0 : i32
    %c0_i32_1 = arith.constant 0 : i32
    return %c0_i32, %c0_i32_0 : i32, i32
  }
  func.func @transform_14(%arg0: i32) -> (i32, i32) {
    %c0_i32 = arith.constant 0 : i32
    %c0_i32_0 = arith.constant 0 : i32
    %c0_i32_1 = arith.constant 0 : i32
    return %c0_i32, %c0_i32_0 : i32, i32
  }
  func.func @transform_15(%arg0: i32) -> (i32, i32, i32) {
    %c0_i32 = arith.constant 0 : i32
    %c0_i32_0 = arith.constant 0 : i32
    %c0_i32_1 = arith.constant 0 : i32
    return %arg0, %c0_i32, %c0_i32_0 : i32, i32, i32
  }
}

</mosaic_0001>

<bundles_post_ra>
// kernel: gavig_forward.2
= control target key start
LH: loop header
LB: loop body
LE: loop exit
PB: predicated region body
PF: predicated region fallthrough
CT: control target
= control target key end

     0   :  { %s1061_s30 = smov 0   ;;  %s1429_s0 = inlined_call_operand.vmem [shape: bf16[2,8,256], index: 0, kind: input, shape index: {}]   ;;  %s1430_s1 = inlined_call_operand.vmem [shape: f32[72,256], index: 1, kind: input, shape index: {}]   ;;  %s1431_s2 = inlined_call_operand.vmem [shape: bf16[8,72], index: 2, kind: input, shape index: {}]   ;;  %s1432_s3 = inlined_call_operand.vmem [shape: f32[8,1], index: 3, kind: input, shape index: {}]   ;;  %s1433_s4 = inlined_call_operand.vmem [shape: bf16[8,72], index: 4, kind: input, shape index: {}]   ;;  %s1434_s5 = inlined_call_operand.vmem [shape: f32[8,1], index: 5, kind: input, shape index: {}]   ;;  %s1435_s6 = inlined_call_operand.vmem [shape: bf16[8,72], index: 6, kind: input, shape index: {}]   ;;  %s1436_s7 = inlined_call_operand.vmem [shape: f32[8,1], index: 7, kind: input, shape index: {}]   ;;  %s1437_s8 = inlined_call_operand.vmem [shape: f32[2,8,256], index: 8, kind: output, shape index: {0}]   ;;  %s1438_s9 = inlined_call_operand.vmem [shape: bf16[2,8,256], index: 9, kind: output, shape index: {1}]  }
   0x1 LB: > { %s901_s10 = sadd.s32 4294967295, %s1000_s30   ;;  %p905_p0 = scmp.ge.s32.totalorder %s1000_s30, 1  ;;  %s1000_s30 = sphi %s1061_s30, %s20_s30  }
   0x2   : > { %p290_p1 = scmp.lt.s32.totalorder %s1000_s30, 3 }
   0x4   : > { %p291_p2 = pnand %p905_p0, %p290_p1 }
   0x5   : > { %p331_p3 = scmp.lt.s32.totalorder (!%p291_p2), %s901_s10, 1  ;;  %s1002_s15 = smov (!%p291_p2), 111  }
   0x6   : > { %294 = sbr.rel (%p291_p2) target bundleno = 1099 (0x44b), region = 52  ;;  %s1003_s16 = smov (!%p291_p2), 112  }
   0x7   : > { %s1004_s17 = smov (!%p291_p2), 113   ;;  %s1005_s18 = smov (!%p291_p2), 127  }
   0x8   : > { %s1006_s19 = smov (!%p291_p2), 1   ;;  %s1007_s20 = smov (!%p291_p2), 15  }
   0x9   : > { %s1008_s21 = smov (!%p291_p2), 16   ;;  %s1009_s22 = smov (!%p291_p2), 17  }
   0xb   : > { %s1440_s10 = smov (!%p331_p3, %s901_s10), 1  ;;  %v1010_v4 = vmov 0   ;;  %v455_v5 = vld [vmem:[%s1432_s3] sm:$0xff]  ;;  %v373_v6 = vlaneseq  ;;  %v1104_v8 = vld [vmem:[%s1430_s1 + $0x48] sm:$0xff]  ;;  %vm465_vm4 = vcmask 1043456   ;;  %v1142_v23 = vld [vmem:[%s1430_s1 + $0x78] sm:$0xff] }
   0xc   : > { %s923_s11 = sshll.u32 %s1440_s10, 3  ;;  %504 = vmatprep.mubr.bf16.mxu0 %v1010_v4  ;;  %984 = vset.pattern.permute.xlu0 %v1010_v4  ;;  %v1113_v15 = vld [vmem:[%s1430_s1 + $0x88] sm:$0xff]  ;;  %v1118_v16 = vld [vmem:[%s1430_s1 + $0x80] sm:$0xff]  ;;  %v1147_v24 = vld [vmem:[%s1430_s1 + $0x70] sm:$0xff]  ;;  %vm461_vm9 = vcmask 588800  }
   0xd   : > { %s335_s14 = scalar_lea.vmem %s1429_s0, %s923_s11  ;;  %639 = vmatprep.mubr.bf16.mxu1 %v1010_v4  ;;  %985 = vset.pattern.permute.xlu1 %v1010_v4  ;;  %v1099_v7 = vand.u32 127, %v373_v6  ;;  %v1123_v17 = vld [vmem:[%s1430_s1 + $0x40] sm:$0xff]  ;;  %v1160_v34 = vld [vmem:[%s1430_s1 + $0x68] sm:$0xff]  ;;  %v1170_v36 = vld [vmem:[%s1430_s1 + $0x58] sm:$0xff]  ;;  %s345_s29 = scalar_lea.vmem %s1438_s9, %s923_s11 }
   0xe   : > { %v347_v0 = vld [vmem:[%s335_s14] sm:$0xff]  ;;  %v1185_v45 = vld [vmem:[%s1430_s1 + $0x50] sm:$0xff]  ;;  %v1195_v56 = vld [vmem:[%s1430_s1 + $0x28] sm:$0xff] }
   0xf   : > { %v1077_v1 = vunpack.c.l.bf16 %v347_v0  ;;  %v1079_v2 = vunpack.c.h.bf16 %v347_v0  ;;  %vm417_vm0 = vcmp.lt.s32.totalorder %v1099_v7, 112  ;;  %vm410_vm1 = vcmp.lt.s32.totalorder %v1099_v7, 113  ;;  %v1165_v35 = vld [vmem:[%s1430_s1 + $0x60] sm:$0xff]  ;;  %v1200_v57 = vld [vmem:[%s1430_s1 + $0x38] sm:$0xff] }
  0x10   : > { %vm403_vm2 = vcmp.lt.s32.totalorder %v1099_v7, 127  ;;  %vm424_vm3 = vcmp.lt.s32.totalorder %v1099_v7, 111  ;;  %vm396_vm5 = vcmp.lt.s32.totalorder %v1099_v7, 1  ;;  %vm389_vm6 = vcmp.lt.s32.totalorder %v1099_v7, 15  ;;  %v1205_v58 = vld [vmem:[%s1430_s1 + $0x20] sm:$0xff] }
  0x11   : > { %v944_v3 = vpack.i.bf16 %v1079_v2, %v1077_v1  ;;  %v1129_v18 = vmul.f32 %v1104_v8, %v1079_v2  ;;  %vm382_vm7 = vcmp.lt.s32.totalorder %v1099_v7, 16  ;;  %vm375_vm8 = vcmp.lt.s32.totalorder %v1099_v7, 17 }
  0x12   : > { %v1155_v29 = vmul.f32 %v1123_v17, %v1077_v1 }
  0x13   : > { %945 = vrot.lane.b32.xlu0 %v944_v3, %s1002_s15  ;;  %955 = vrot.lane.b32.xlu1 %v944_v3, %s1003_s16 }
  0x17   : > { %950 = vrot.lane.b32.xlu0 %v944_v3, %s1004_s17  ;;  %960 = vrot.lane.b32.xlu1 %v944_v3, %s1005_s18 }
  0x1b   : > { %970 = vrot.lane.b32.xlu1 %v944_v3, %s1006_s19  ;;  %965 = vrot.lane.b32.xlu0 %v944_v3, %s1007_s20 }
  0x1f   : > { %980 = vrot.lane.b32.xlu1 %v944_v3, %s1008_s21  ;;  %975 = vrot.lane.b32.xlu0 %v944_v3, %s1009_s22 }
  0x23   : > { %458 = vperm.xlu0 %984, %v455_v5  }
  0x85   : > { %v946_v9 = vpop.permute.xlu0 %945  ;;  %v956_v10 = vpop.permute.xlu1 %955 }
  0x86   : > { %v948_v11 = vunpack.i.h.bf16 %v946_v9  ;;  %v947_v12 = vunpack.i.l.bf16 %v946_v9  ;;  %v958_v13 = vunpack.i.h.bf16 %v956_v10  ;;  %v957_v14 = vunpack.i.l.bf16 %v956_v10  ;;  %v1220_v9 = vld [vmem:[%s1430_s1 + $0x30] sm:$0xff] }
  0x88   : > { %v418_v19 = vsel %vm417_vm0, %v957_v14, %v958_v13  ;;  %v419_v20 = vsel %vm417_vm0, %v958_v13, %v957_v14  ;;  %v426_v21 = vsel %vm424_vm3, %v948_v11, %v947_v12  ;;  %v425_v22 = vsel %vm424_vm3, %v947_v12, %v948_v11 }
  0x89   : > { %v951_v25 = vpop.permute.xlu0 %950  ;;  %v961_v26 = vpop.permute.xlu1 %960  ;;  %v444_v27 = vmul.f32 %v426_v21, %v1113_v15  ;;  %v443_v28 = vmul.f32 %v425_v22, %v1118_v16  ;;  %v442_v39 = vmul.f32 %v419_v20, %v1142_v23  ;;  %v441_v40 = vmul.f32 %v418_v19, %v1147_v24 }
  0x8a   : > { %v953_v30 = vunpack.i.h.bf16 %v951_v25  ;;  %v952_v31 = vunpack.i.l.bf16 %v951_v25  ;;  %v963_v32 = vunpack.i.h.bf16 %v961_v26  ;;  %v962_v33 = vunpack.i.l.bf16 %v961_v26  ;;  %v1229_v25 = vld [vmem:[%s1430_s1 + $0x8] sm:$0xff]  ;;  %v1234_v26 = vld [vmem:[%s1430_s1 + $0x18] sm:$0xff] }
  0x8b   : > { %v454_v37 = vpack.c.bf16 %v444_v27, %v444_v27  ;;  %v453_v38 = vpack.c.bf16 %v443_v28, %v443_v28 }
  0x8c   : > { %v411_v41 = vsel %vm410_vm1, %v952_v31, %v953_v30  ;;  %v412_v42 = vsel %vm410_vm1, %v953_v30, %v952_v31  ;;  %v404_v43 = vsel %vm403_vm2, %v962_v33, %v963_v32  ;;  %v405_v44 = vsel %vm403_vm2, %v963_v32, %v962_v33  ;;  %v1245_v30 = vld [vmem:[%s1430_s1 + $0x10] sm:$0xff] }
  0x8d   : > { %912 = vmatprep.subr.msk.bf16.mxu0 %vm465_vm4, %v454_v37  ;;  %v467_v46 = vsel %vm465_vm4, %v453_v38, 0  ;;  %v971_v47 = vpop.permute.xlu1 %970  ;;  %v966_v48 = vpop.permute.xlu0 %965  ;;  %v440_v49 = vmul.f32 %v412_v42, %v1160_v34  ;;  %v439_v50 = vmul.f32 %v411_v41, %v1165_v35  ;;  %v438_v51 = vmul.f32 %v405_v44, %v1170_v36 }
  0x8e   : > { %479 = vmatpush1.bf16.msra.mxu0 %v467_v46  ;;  %v973_v52 = vunpack.i.h.bf16 %v971_v47  ;;  %v972_v53 = vunpack.i.l.bf16 %v971_v47  ;;  %v968_v54 = vunpack.i.h.bf16 %v966_v48  ;;  %v967_v55 = vunpack.i.l.bf16 %v966_v48  ;;  %v368_v46 = vld [vmem:[%s1431_s2] sm:$0xf] }
  0x8f   : > { %v452_v59 = vpack.c.bf16 %v442_v39, %v440_v49  ;;  %v451_v60 = vpack.c.bf16 %v441_v40, %v439_v50  ;;  %v450_v61 = vpack.c.bf16 %v438_v51, %v1129_v18  ;;  %v437_v62 = vmul.f32 %v404_v43, %v1185_v45 }
  0x90   : > { %v397_v63 = vsel %vm396_vm5, %v972_v53, %v973_v52  ;;  %v398_v0 = vsel %vm396_vm5, %v973_v52, %v972_v53  ;;  %v390_v3 = vsel %vm389_vm6, %v967_v55, %v968_v54  ;;  %v391_v5 = vsel %vm389_vm6, %v968_v54, %v967_v55 }
  0x91   : > { %480 = vmatprep.subr.bf16.mxu0 %v452_v59  ;;  %v981_v10 = vpop.permute.xlu1 %980  ;;  %v976_v11 = vpop.permute.xlu0 %975  ;;  %v449_v12 = vpack.c.bf16 %v437_v62, %v1155_v29  ;;  %v432_v13 = vmul.f32 %v390_v3, %v1195_v56  ;;  %v434_v14 = vmul.f32 %v397_v63, %v1200_v57  ;;  %v431_v18 = vmul.f32 %v391_v5, %v1205_v58  ;;  %v1240_v29 = vld [vmem:[%s1430_s1] sm:$0xff] }
  0x92   : > { %481 = vmatpush1.bf16.msra.mxu0 %v451_v60  ;;  %v983_v19 = vunpack.i.h.bf16 %v981_v10  ;;  %v982_v20 = vunpack.i.l.bf16 %v981_v10  ;;  %v978_v21 = vunpack.i.h.bf16 %v976_v11  ;;  %v977_v22 = vunpack.i.l.bf16 %v976_v11 }
  0x93   : > { %482 = vmatprep.subr.bf16.mxu0 %v450_v61  ;;  %v448_v27 = vpack.c.bf16 %v434_v14, %v432_v13  ;;  %v433_v28 = vmul.f32 %v398_v0, %v1220_v9 }
  0x94   : > { %v383_v31 = vsel %vm382_vm7, %v982_v20, %v983_v19  ;;  %v384_v32 = vsel %vm382_vm7, %v983_v19, %v982_v20  ;;  %v376_v33 = vsel %vm375_vm8, %v977_v22, %v978_v21  ;;  %v377_v37 = vsel %vm375_vm8, %v978_v21, %v977_v22 }
  0x95   : > { %v428_v38 = vmul.f32 %v376_v33, %v1229_v25  ;;  %v430_v39 = vmul.f32 %v383_v31, %v1234_v26  ;;  %v447_v40 = vpack.c.bf16 %v433_v28, %v431_v18  ;;  %v427_v41 = vmul.f32 %v377_v37, %v1240_v29 }
  0x96   : > { %483 = vmatpush1.bf16.msra.mxu0 %v449_v12  ;;  %v429_v42 = vmul.f32 %v384_v32, %v1245_v30 }
  0x97   : > { %484 = vmatprep.subr.bf16.mxu0 %v448_v27  ;;  %v446_v43 = vpack.c.bf16 %v430_v39, %v428_v38 }
  0x98   : > { %v445_v44 = vpack.c.bf16 %v429_v42, %v427_v41 }
  0x9a   : > { %485 = vmatpush1.bf16.msra.mxu0 %v447_v40 }
  0x9b   : > { %486 = vmatprep.subr.bf16.mxu0 %v446_v43 }
  0x9e   : > { %487 = vmatpush1.bf16.msra.mxu0 %v445_v44  ;;  %v459_v47 = vpop.permute.xlu0 %458 }
  0xa1   : > { %913 = vmatmul.mubr.msk.bf16.vlgmr.msra.gmra.mxu0 %vm461_vm9, %v368_v46 }
  0xa2   : > { %774 = vmatprep.mubr.bf16.mxu0 %v1010_v4  ;;  %v592_v4 = vld [vmem:[%s1434_s5] sm:$0xff] }
 0x161   : > { %v506_v48 = vpop.f32.mrf.mxu0 }
 0x162   : > { %v507_v49 = vadd.f32 %v506_v48, %v459_v47 }
 0x163   : > { %v508_v50 = vpop.f32.mrf.mxu0 }
 0x164   : > { %v513_v51 = vmax.f32 %v507_v49, 0.0  ;;  %v509_v52 = vadd.f32 %v508_v50, %v459_v47 }
 0x165   : > { %v510_v53 = vpop.f32.mrf.mxu0 }
 0x166   : > { %546 = vrot.lane.b32.xlu0 %v513_v51, %s1004_s17  ;;  %558 = vrot.lane.b32.xlu1 %v513_v51, %s1002_s15  ;;  %v514_v55 = vmax.f32 %v509_v52, 0.0  ;;  %v572_v46 = vmul.f32 %v513_v51, %v1123_v17 }
 0x167   : > { %v511_v54 = vpop.f32.mrf.mxu0 }
 0x168   : > { %v573_v44 = vmul.f32 %v514_v55, %v1104_v8 }
 0x16a   : > { %552 = vrot.lane.b32.xlu0 %v513_v51, %s1003_s16  ;;  %560 = vrot.lane.b32.xlu1 %v514_v55, %s1002_s15 }
 0x16e   : > { %540 = vrot.lane.b32.xlu0 %v513_v51, %s1005_s18  ;;  %548 = vrot.lane.b32.xlu1 %v514_v55, %s1004_s17 }
 0x172   : > { %528 = vrot.lane.b32.xlu0 %v513_v51, %s1007_s20  ;;  %554 = vrot.lane.b32.xlu1 %v514_v55, %s1003_s16 }
 0x176   : > { %534 = vrot.lane.b32.xlu0 %v513_v51, %s1006_s19  ;;  %542 = vrot.lane.b32.xlu1 %v514_v55, %s1005_s18 }
 0x17a   : > { %516 = vrot.lane.b32.xlu0 %v513_v51, %s1009_s22  ;;  %530 = vrot.lane.b32.xlu1 %v514_v55, %s1007_s20 }
 0x17e   : > { %522 = vrot.lane.b32.xlu0 %v513_v51, %s1008_s21  ;;  %536 = vrot.lane.b32.xlu1 %v514_v55, %s1006_s19 }
 0x182   : > { %595 = vperm.xlu0 %984, %v592_v4   ;;  %518 = vrot.lane.b32.xlu1 %v514_v55, %s1009_s22 }
 0x186   : > { %524 = vrot.lane.b32.xlu1 %v514_v55, %s1008_s21 }
 0x1d8   : > { %v547_v59 = vpop.permute.xlu0 %546  ;;  %v559_v60 = vpop.permute.xlu1 %558 }
 0x1dc   : > { %v553_v61 = vpop.permute.xlu0 %552  ;;  %v561_v62 = vpop.permute.xlu1 %560 }
 0x1dd   : > { %v562_v63 = vsel %vm424_vm3, %v559_v60, %v561_v62  ;;  %v563_v0 = vsel %vm424_vm3, %v561_v62, %v559_v60 }
 0x1de   : > { %v580_v3 = vmul.f32 %v562_v63, %v1118_v16  ;;  %v581_v5 = vmul.f32 %v563_v0, %v1113_v15 }
 0x1e0   : > { %v541_v10 = vpop.permute.xlu0 %540  ;;  %v549_v11 = vpop.permute.xlu1 %548  ;;  %v591_v12 = vpack.c.bf16 %v581_v5, %v581_v5  ;;  %v590_v13 = vpack.c.bf16 %v580_v3, %v580_v3 }
 0x1e1   : > { %v550_v18 = vsel %vm410_vm1, %v547_v59, %v549_v11  ;;  %v551_v19 = vsel %vm410_vm1, %v549_v11, %v547_v59 }
 0x1e2   : > { %914 = vmatprep.subr.msk.bf16.mxu1 %vm465_vm4, %v591_v12  ;;  %v602_v14 = vsel %vm465_vm4, %v590_v13, 0  ;;  %v576_v27 = vmul.f32 %v550_v18, %v1165_v35  ;;  %v577_v28 = vmul.f32 %v551_v19, %v1160_v34 }
 0x1e3   : > { %614 = vmatpush1.bf16.msra.mxu1 %v602_v14 }
 0x1e4   : > { %v555_v20 = vpop.permute.xlu1 %554  ;;  %v529_v31 = vpop.permute.xlu0 %528 }
 0x1e5   : > { %v556_v21 = vsel %vm417_vm0, %v553_v61, %v555_v20  ;;  %v557_v22 = vsel %vm417_vm0, %v555_v20, %v553_v61 }
 0x1e6   : > { %v578_v32 = vmul.f32 %v556_v21, %v1147_v24  ;;  %v579_v33 = vmul.f32 %v557_v22, %v1142_v23 }
 0x1e8   : > { %v543_v37 = vpop.permute.xlu1 %542  ;;  %v589_v38 = vpack.c.bf16 %v579_v33, %v577_v28  ;;  %v588_v39 = vpack.c.bf16 %v578_v32, %v576_v27  ;;  %v535_v47 = vpop.permute.xlu0 %534  ;;  %v515_v28 = vld [vmem:[%s1433_s4] sm:$0xf] }
 0x1e9   : > { %v544_v40 = vsel %vm403_vm2, %v541_v10, %v543_v37  ;;  %v545_v41 = vsel %vm403_vm2, %v543_v37, %v541_v10 }
 0x1ea   : > { %v574_v42 = vmul.f32 %v544_v40, %v1185_v45  ;;  %v575_v43 = vmul.f32 %v545_v41, %v1170_v36  ;;  %615 = vmatprep.subr.bf16.mxu1 %v589_v38 }
 0x1eb   : > { %616 = vmatpush1.bf16.msra.mxu1 %v588_v39 }
 0x1ec   : > { %v531_v48 = vpop.permute.xlu1 %530  ;;  %v587_v49 = vpack.c.bf16 %v575_v43, %v573_v44  ;;  %v586_v50 = vpack.c.bf16 %v574_v42, %v572_v46  ;;  %v517_v55 = vpop.permute.xlu0 %516  ;;  %v727_v43 = vld [vmem:[%s1436_s7] sm:$0xff] }
 0x1ed   : > { %v532_v52 = vsel %vm389_vm6, %v529_v31, %v531_v48  ;;  %v533_v53 = vsel %vm389_vm6, %v531_v48, %v529_v31 }
 0x1ee   : > { %617 = vmatprep.subr.bf16.mxu1 %v587_v49  ;;  %v568_v59 = vmul.f32 %v533_v53, %v1205_v58  ;;  %v569_v60 = vmul.f32 %v532_v52, %v1195_v56 }
 0x1ef   : > { %618 = vmatpush1.bf16.msra.mxu1 %v586_v50 }
 0x1f0   : > { %v537_v54 = vpop.permute.xlu1 %536  ;;  %v523_v11 = vpop.permute.xlu0 %522 }
 0x1f1   : > { %v538_v4 = vsel %vm396_vm5, %v535_v47, %v537_v54  ;;  %v539_v51 = vsel %vm396_vm5, %v537_v54, %v535_v47 }
 0x1f2   : > { %v570_v61 = vmul.f32 %v539_v51, %v1220_v9  ;;  %v571_v62 = vmul.f32 %v538_v4, %v1200_v57 }
 0x1f4   : > { %v519_v63 = vpop.permute.xlu1 %518  ;;  %v585_v0 = vpack.c.bf16 %v571_v62, %v569_v60  ;;  %v584_v3 = vpack.c.bf16 %v570_v61, %v568_v59 }
 0x1f5   : > { %v520_v5 = vsel %vm375_vm8, %v517_v55, %v519_v63  ;;  %v521_v10 = vsel %vm375_vm8, %v519_v63, %v517_v55 }
 0x1f6   : > { %619 = vmatprep.subr.bf16.mxu1 %v585_v0  ;;  %v564_v18 = vmul.f32 %v521_v10, %v1240_v29  ;;  %v565_v19 = vmul.f32 %v520_v5, %v1229_v25 }
 0x1f7   : > { %620 = vmatpush1.bf16.msra.mxu1 %v584_v3 }
 0x1f8   : > { %v525_v12 = vpop.permute.xlu1 %524 }
 0x1f9   : > { %v526_v13 = vsel %vm382_vm7, %v523_v11, %v525_v12  ;;  %v527_v14 = vsel %vm382_vm7, %v525_v12, %v523_v11 }
 0x1fa   : > { %v566_v20 = vmul.f32 %v527_v14, %v1245_v30  ;;  %v567_v21 = vmul.f32 %v526_v13, %v1234_v26 }
 0x1fc   : > { %v583_v22 = vpack.c.bf16 %v567_v21, %v565_v19  ;;  %v582_v27 = vpack.c.bf16 %v566_v20, %v564_v18 }
 0x1fd   : > { %v596_v31 = vpop.permute.xlu0 %595 }
 0x1fe   : > { %621 = vmatprep.subr.bf16.mxu1 %v583_v22 }
 0x1ff   : > { %622 = vmatpush1.bf16.msra.mxu1 %v582_v27 }
 0x202   : > { %915 = vmatmul.mubr.msk.bf16.vlgmr.msra.gmra.mxu1 %vm461_vm9, %v515_v28 }
 0x2c2   : > { %v641_v32 = vpop.f32.mrf.mxu1 }
 0x2c3   : > { %v642_v33 = vadd.f32 %v641_v32, %v596_v31 }
 0x2c4   : > { %v643_v37 = vpop.f32.mrf.mxu1 }
 0x2c5   : > { %v648_v38 = vmax.f32 %v642_v33, 0.0  ;;  %v644_v39 = vadd.f32 %v643_v37, %v596_v31 }
 0x2c6   : > { %v645_v40 = vpop.f32.mrf.mxu1 }
 0x2c7   : > { %v649_v41 = vmax.f32 %v644_v39, 0.0  ;;  %693 = vrot.lane.b32.xlu1 %v648_v38, %s1002_s15  ;;  %v707_v18 = vmul.f32 %v648_v38, %v1123_v17 }
 0x2c8   : > { %v646_v42 = vpop.f32.mrf.mxu1 }
 0x2c9   : > { %695 = vrot.lane.b32.xlu0 %v649_v41, %s1002_s15 }
 0x2cb   : > { %681 = vrot.lane.b32.xlu1 %v648_v38, %s1004_s17 }
 0x2cd   : > { %683 = vrot.lane.b32.xlu0 %v649_v41, %s1004_s17 }
 0x2cf   : > { %687 = vrot.lane.b32.xlu1 %v648_v38, %s1003_s16 }
 0x2d1   : > { %689 = vrot.lane.b32.xlu0 %v649_v41, %s1003_s16 }
 0x2d3   : > { %675 = vrot.lane.b32.xlu1 %v648_v38, %s1005_s18 }
 0x2d5   : > { %677 = vrot.lane.b32.xlu0 %v649_v41, %s1005_s18 }
 0x2d7   : > { %663 = vrot.lane.b32.xlu1 %v648_v38, %s1007_s20 }
 0x2d9   : > { %665 = vrot.lane.b32.xlu0 %v649_v41, %s1007_s20 }
 0x2db   : > { %669 = vrot.lane.b32.xlu1 %v648_v38, %s1006_s19 }
 0x2dd   : > { %671 = vrot.lane.b32.xlu0 %v649_v41, %s1006_s19  ;;  %s924_s19 = sshll.u32 %s1440_s10, 4 }
 0x2df   : > { %651 = vrot.lane.b32.xlu1 %v648_v38, %s1009_s22 }
 0x2e1   : > { %653 = vrot.lane.b32.xlu0 %v649_v41, %s1009_s22  ;;  %s340_s22 = scalar_lea.vmem %s1437_s8, %s924_s19 }
 0x2e3   : > { %657 = vrot.lane.b32.xlu1 %v648_v38, %s1008_s21 }
 0x2e5   : > { %659 = vrot.lane.b32.xlu0 %v649_v41, %s1008_s21 }
 0x2e7   : > { %730 = vperm.xlu1 %985, %v727_v43  }
 0x339   : > { %v694_v44 = vpop.permute.xlu1 %693 }
 0x33b   : > { %v696_v46 = vpop.permute.xlu0 %695 }
 0x33c   : > { %v697_v47 = vsel %vm424_vm3, %v694_v44, %v696_v46  ;;  %v698_v48 = vsel %vm424_vm3, %v696_v46, %v694_v44 }
 0x33d   : > { %v715_v49 = vmul.f32 %v697_v47, %v1118_v16  ;;  %v716_v50 = vmul.f32 %v698_v48, %v1113_v15  ;;  %v682_v52 = vpop.permute.xlu1 %681 }
 0x33f   : > { %v725_v53 = vpack.c.bf16 %v715_v49, %v715_v49  ;;  %v726_v54 = vpack.c.bf16 %v716_v50, %v716_v50  ;;  %v684_v4 = vpop.permute.xlu0 %683  ;;  %v650_v50 = vld [vmem:[%s1435_s6] sm:$0xf] }
 0x340   : > { %v685_v59 = vsel %vm410_vm1, %v682_v52, %v684_v4  ;;  %v686_v60 = vsel %vm410_vm1, %v684_v4, %v682_v52 }
 0x341   : > { %916 = vmatprep.subr.msk.bf16.mxu0 %vm465_vm4, %v726_v54  ;;  %v688_v51 = vpop.permute.xlu1 %687  ;;  %v737_v55 = vsel %vm465_vm4, %v725_v53, 0  ;;  %v711_v62 = vmul.f32 %v685_v59, %v1165_v35  ;;  %v712_v63 = vmul.f32 %v686_v60, %v1160_v34 }
 0x342   : > { %749 = vmatpush1.bf16.msra.mxu0 %v737_v55 }
 0x343   : > { %v690_v61 = vpop.permute.xlu0 %689 }
 0x344   : > { %v691_v15 = vsel %vm417_vm0, %v688_v51, %v690_v61  ;;  %v692_v16 = vsel %vm417_vm0, %v690_v61, %v688_v51  ;;  %v796_v61 = vshrl.u32 %v373_v6, 7 }
 0x345   : > { %v713_v0 = vmul.f32 %v691_v15, %v1147_v24  ;;  %v714_v3 = vmul.f32 %v692_v16, %v1142_v23  ;;  %v676_v5 = vpop.permute.xlu1 %675  ;;  %v708_v23 = vmul.f32 %v649_v41, %v1104_v8 }
 0x346   : > { %vm797_vm10 = vcmp.lt.s32.totalorder %v796_v61, 3 }
 0x347   : > { %v723_v10 = vpack.c.bf16 %v713_v0, %v711_v62  ;;  %v678_v11 = vpop.permute.xlu0 %677  ;;  %v724_v12 = vpack.c.bf16 %v714_v3, %v712_v63 }
 0x348   : > { %v679_v13 = vsel %vm403_vm2, %v676_v5, %v678_v11  ;;  %v680_v14 = vsel %vm403_vm2, %v678_v11, %v676_v5 }
 0x349   : > { %v709_v35 = vmul.f32 %v679_v13, %v1185_v45  ;;  %v710_v34 = vmul.f32 %v680_v14, %v1170_v36  ;;  %750 = vmatprep.subr.bf16.mxu0 %v724_v12  ;;  %v664_v24 = vpop.permute.xlu1 %663 }
 0x34a   : > { %751 = vmatpush1.bf16.msra.mxu0 %v723_v10 }
 0x34b   : > { %v721_v19 = vpack.c.bf16 %v709_v35, %v707_v18  ;;  %v666_v20 = vpop.permute.xlu0 %665  ;;  %v722_v21 = vpack.c.bf16 %v710_v34, %v708_v23 }
 0x34c   : > { %v667_v27 = vsel %vm389_vm6, %v664_v24, %v666_v20  ;;  %v668_v17 = vsel %vm389_vm6, %v666_v20, %v664_v24 }
 0x34d   : > { %752 = vmatprep.subr.bf16.mxu0 %v722_v21  ;;  %v670_v22 = vpop.permute.xlu1 %669  ;;  %v703_v28 = vmul.f32 %v668_v17, %v1205_v58  ;;  %v704_v31 = vmul.f32 %v667_v27, %v1195_v56 }
 0x34e   : > { %753 = vmatpush1.bf16.msra.mxu0 %v721_v19 }
 0x34f   : > { %v672_v45 = vpop.permute.xlu0 %671 }
 0x350   : > { %v673_v36 = vsel %vm396_vm5, %v670_v22, %v672_v45  ;;  %v674_v8 = vsel %vm396_vm5, %v672_v45, %v670_v22 }
 0x351   : > { %v705_v32 = vmul.f32 %v674_v8, %v1220_v9  ;;  %v706_v33 = vmul.f32 %v673_v36, %v1200_v57  ;;  %v652_v37 = vpop.permute.xlu1 %651 }
 0x353   : > { %v719_v38 = vpack.c.bf16 %v705_v32, %v703_v28  ;;  %v654_v39 = vpop.permute.xlu0 %653  ;;  %v720_v40 = vpack.c.bf16 %v706_v33, %v704_v31 }
 0x354   : > { %v655_v41 = vsel %vm375_vm8, %v652_v37, %v654_v39  ;;  %v656_v42 = vsel %vm375_vm8, %v654_v39, %v652_v37 }
 0x355   : > { %754 = vmatprep.subr.bf16.mxu0 %v720_v40  ;;  %v658_v43 = vpop.permute.xlu1 %657  ;;  %v699_v9 = vmul.f32 %v656_v42, %v1240_v29  ;;  %v700_v44 = vmul.f32 %v655_v41, %v1229_v25 }
 0x356   : > { %755 = vmatpush1.bf16.msra.mxu0 %v719_v38 }
 0x357   : > { %v660_v58 = vpop.permute.xlu0 %659 }
 0x358   : > { %v661_v56 = vsel %vm382_vm7, %v658_v43, %v660_v58  ;;  %v662_v57 = vsel %vm382_vm7, %v660_v58, %v658_v43 }
 0x359   : > { %v701_v46 = vmul.f32 %v662_v57, %v1245_v30  ;;  %v702_v47 = vmul.f32 %v661_v56, %v1234_v26 }
 0x35b   : > { %v717_v48 = vpack.c.bf16 %v701_v46, %v699_v9  ;;  %v718_v49 = vpack.c.bf16 %v702_v47, %v700_v44 }
 0x35d   : > { %756 = vmatprep.subr.bf16.mxu0 %v718_v49 }
 0x35e   : > { %757 = vmatpush1.bf16.msra.mxu0 %v717_v48 }
 0x361   : > { %917 = vmatmul.mubr.msk.bf16.vlgmr.msra.gmra.mxu0 %vm461_vm9, %v650_v50 }
 0x362   : > { %v731_v7 = vpop.permute.xlu1 %730 }
 0x421   : > { %v776_v52 = vpop.f32.mrf.mxu0 }
 0x422   : > { %v777_v53 = vadd.f32 %v776_v52, %v731_v7 }
 0x423   : > { %v778_v29 = vpop.f32.mrf.mxu0 }
 0x424   : > { %v918_v25 = vmul.f32 -1.442695, %v777_v53  ;;  %v779_v54 = vadd.f32 %v778_v29, %v731_v7 }
 0x425   : > { %v780_v30 = vpop.f32.mrf.mxu0 }
 0x426   : > { %986 = vpow2.f32 %v918_v25  ;;  %v919_v26 = vmul.f32 -1.442695, %v779_v54 }
 0x427   : > { %v781_v4 = vpop.f32.mrf.mxu0 }
 0x428   : > { %988 = vpow2.f32 %v919_v26 }
 0x433   : > { %v987_v51 = vpop.eup %986 }
 0x434   : > { %v789_v55 = vadd.f32 1.0, %v987_v51 }
 0x435   : > { %v989_v59 = vpop.eup %988 }
 0x436   : > { %990 = vrcp.f32 %v789_v55  ;;  %v790_v60 = vadd.f32 1.0, %v989_v59 }
 0x438   : > { %992 = vrcp.f32 %v790_v60 }
 0x443   : > { %v991_v15 = vpop.eup %990 }
 0x444   : > { %v798_v16 = vsel %vm797_vm10, %v991_v15, 0.0  ;;  %v802_v63 = vmul.f32 %v991_v15, %v1077_v1 }
 0x445   : > { %v993_v62 = vpop.eup %992  ;;  %800 = vst [vmem:[%s340_s22] sm:$0xff] %v798_v16 }
 0x446   : > { %v799_v0 = vsel %vm797_vm10, %v993_v62, 0.0  ;;  %v803_v3 = vmul.f32 %v993_v62, %v1079_v2 }
 0x447   : > { %801 = vst [vmem:[%s340_s22 + $0x8] sm:$0xff] %v799_v0 }
 0x448   : > { %v926_v6 = vpack.c.bf16 %v803_v3, %v802_v63 }
 0x44a   : > { %812 = vst [vmem:[%s345_s29] sm:$0xff] %v926_v6 }
 0x44b PF: > { %s20_s30 = sadd.s32 1, %s1000_s30  }
 0x44c   : > { %p17_p4 = scmp.ge.s32.totalorder %s20_s30, 4  }
 0x44e   :  { %19 = sbr.rel (!%p17_p4) target bundleno = 1 (0x1), region = 94 }

// kernel: gavig_forward.3
= control target key start
LH: loop header
LB: loop body
LE: loop exit
PB: predicated region body
PF: predicated region fallthrough
CT: control target
= control target key end

     0   :  { %20 = vsyncpa [#allocation3], 0  ;;  %s2486_s0 = inlined_call_operand.vmem [shape: bf16[2,16,128], index: 0, kind: input, shape index: {}]   ;;  %s2487_s1 = inlined_call_operand.vmem [shape: bf16[128,128], index: 1, kind: input, shape index: {}]   ;;  %s2488_s2 = inlined_call_operand.vmem [shape: f32[1,128], index: 2, kind: input, shape index: {}]   ;;  %s2489_s3 = inlined_call_operand.vmem [shape: bf16[128,128], index: 3, kind: input, shape index: {}]   ;;  %s2490_s4 = inlined_call_operand.vmem [shape: f32[1,128], index: 4, kind: input, shape index: {}]   ;;  %s2491_s5 = inlined_call_operand.vmem [shape: bf16[256,128], index: 5, kind: input, shape index: {}]   ;;  %s2492_s6 = inlined_call_operand.vmem [shape: f32[1,128], index: 6, kind: input, shape index: {}]   ;;  %s2493_s7 = inlined_call_operand.vmem [shape: bf16[128,128], index: 7, kind: input, shape index: {}]   ;;  %s2494_s8 = inlined_call_operand.vmem [shape: f32[1,128], index: 8, kind: input, shape index: {}]   ;;  %s2495_s9 = inlined_call_operand.vmem [shape: bf16[128,128], index: 9, kind: input, shape index: {}]   ;;  %s2496_s10 = inlined_call_operand.vmem [shape: f32[1,128], index: 10, kind: input, shape index: {}]   ;;  %s2497_s11 = inlined_call_operand.vmem [shape: bf16[128,128], index: 11, kind: input, shape index: {}]   ;;  %s2498_s12 = inlined_call_operand.vmem [shape: f32[1,128], index: 12, kind: input, shape index: {}]   ;;  %s2499_s13 = inlined_call_operand.vmem [shape: bf16[128,128], index: 13, kind: input, shape index: {}]   ;;  %s2500_s14 = inlined_call_operand.vmem [shape: f32[1,128], index: 14, kind: input, shape index: {}]   ;;  %s2501_s15 = inlined_call_operand.hbm [shape: f32[2,1,128], index: 15, kind: output, shape index: {}]  }
   0x1   :  { %22 = vsyncpa [#allocation3 + $0x1], 0  ;;  %s2094_s18 = smov 0   ;;  %s2096_s19 = smov 0  }
   0x2   :  { %s2098_s20 = smov 0   ;;  %s2100_s21 = smov 0  }
   0x3 LB: > { %2507 = sst [smem:[#allocation5_spill]] %s1996_s18  ;;  %s2115_s22 = sadd.s32 4294967295, %s2008_s21   ;;  %s2008_s21 = sphi %s2100_s21, %s2516_s21   ;;  %s2004_s20 = sphi %s2098_s20, %s2518_s20   ;;  %s2000_s19 = sphi %s2096_s19, %s2520_s19   ;;  %s1996_s18 = sphi %s2094_s18, %s2519_s18  }
   0x4   : > { %2508 = sst [smem:[#allocation6_spill]] %s2004_s20  ;;  %s1548_s23 = sadd.s32 4294967294, %s2008_s21  }
   0x5   : > { %s2119_s24 = sadd.s32 1, %s2008_s21   ;;  %s355_s25 = sadd.s32 1, %s2004_s20 }
   0x6   : > { %2509 = sst [smem:[#allocation7_spill]] %s2119_s24  ;;  %s352_s26 = ssub.s32 %s2008_s21, %s2119_s24 }
   0x7   : > { %p365_p0 = scmp.ne.s32.totalorder %s2004_s20, %s2000_s19  ;;  %p353_p1 = scmp.eq.s32.totalorder %s352_s26, 0 }
   0x8   : > { %p366_p2 = scmp.eq.s32.totalorder %s2115_s22, 1  ;;  %p371_p3 = scmp.ne.s32.totalorder %s2000_s19, %s1996_s18 }
   0x9   : > { %p372_p4 = scmp.eq.s32.totalorder %s1548_s23, 1  ;;  %p1551_p7 = scmp.ge.s32.totalorder %s2008_s21, 1 }
   0xa   : > { %s2130_s27 = scalar_select %p353_p1, %s2004_s20, %s355_s25  }
   0xb   : > { %p2132_p5 = por %p366_p2, %p365_p0  ;;  %p2136_p6 = por %p372_p4, %p371_p3 }
   0xc   : > { %2510 = sst [smem:[#allocation8_spill]] %s2130_s27  ;;  %p440_p8 = scmp.lt.s32.totalorder %s2008_s21, 3 }
   0xd   : > { %s2512_s29 = scalar_select %p2136_p6, 1, 0 }
   0xe   : > { %p441_p9 = pnand %p1551_p7, %p440_p8 }
   0xf   : > { %2513 = sst [smem:[#allocation9_spill]] %s2512_s29  ;;  %p487_p10 = scmp.lt.s32.totalorder (!%p441_p9), %s2115_s22, 1 }
  0x10   : > { %444 = sbr.rel (%p441_p9) target bundleno = 1610 (0x64a), region = 80  ;;  %s485_s26 = sand.u32 (!%p441_p9), 1, %s2000_s19  }
  0x11   : > { %s1625_s30 = sshll.u32 (!%p441_p9), %s2115_s22, 4  ;;  %s1481_s17 = scalar_lea.sflag (!%p441_p9), [#allocation3], %s485_s26 }
  0x12   : > { %s2445_s29 = scalar_lea.hbm (!%p441_p9), %s2501_s15, %s1625_s30 }
  0x15   : > { %v1867_v0 = vld [vmem:[%s2487_s1 + $0x38] sm:$0xff]   ;;  %v2010_v1 = vmov 0.0   ;;  %v1868_v2 = vld [vmem:[%s2487_s1 + $0x30] sm:$0xff]   ;;  %vm2011_vm0 = vmmov 0   ;;  %s488_s25 = scalar_select %p487_p10, %s2115_s22, 1  ;;  %v1869_v3 = vld [vmem:[%s2487_s1 + $0x28] sm:$0xff]  }
  0x16   : > { %1705 = vmatprep.subr.bf16.mxu0 %v2010_v1  ;;  %1725 = vmatprep.subr.bf16.mxu1 %v2010_v1  ;;  %v1876_v4 = vld [vmem:[%s2489_s3 + $0x38] sm:$0xff]   ;;  %v1870_v5 = vld [vmem:[%s2487_s1 + $0x20] sm:$0xff]   ;;  %v1877_v6 = vld [vmem:[%s2489_s3 + $0x30] sm:$0xff]   ;;  %s2013_s22 = smov [#allocation2]  }
  0x17   : > { %1706 = vmatpush3.bf16.msra.mxu0 %v1867_v0  ;;  %1721 = vmatprep.mubr.msk.bf16.mxu0 %vm2011_vm0, %v2010_v1  ;;  %s1628_s16 = sshll.u32 %s488_s25, 3  ;;  %v1871_v7 = vld [vmem:[%s2487_s1 + $0x18] sm:$0xff]   ;;  %v1878_v8 = vld [vmem:[%s2489_s3 + $0x28] sm:$0xff]   ;;  %v1872_v9 = vld [vmem:[%s2487_s1 + $0x10] sm:$0xff]   ;;  %s1952_s25 = sshll.u32 %s2013_s22, 4  ;;  %s1953_s25 = int_to_ptr.vmem [resolvable:$false] %s1952_s25 }
  0x18   : > { %1707 = vmatprep.subr.bf16.mxu0 %v2010_v1  ;;  %1741 = vmatprep.mubr.msk.bf16.mxu1 %vm2011_vm0, %v2010_v1  ;;  %s491_s27 = scalar_lea.vmem %s2486_s0, %s1628_s16  ;;  %v1879_v10 = vld [vmem:[%s2489_s3 + $0x20] sm:$0xff]   ;;  %v1873_v11 = vld [vmem:[%s2487_s1 + $0x8] sm:$0xff]   ;;  %v1880_v12 = vld [vmem:[%s2489_s3 + $0x18] sm:$0xff]   ;;  %s486_s16 = scalar_lea.vmem [#allocation2], %s485_s26 }
  0x19   : > { %1726 = vmatpush3.bf16.msra.mxu1 %v1876_v4  ;;  %v1874_v13 = vld [vmem:[%s2487_s1] sm:$0xff]   ;;  %v1881_v14 = vld [vmem:[%s2489_s3 + $0x10] sm:$0xff]   ;;  %v1882_v16 = vld [vmem:[%s2489_s3 + $0x8] sm:$0xff]   ;;  %s1493_s20 = sshll.u32 %s486_s16, 4  ;;  %s2447_s20 = int_to_ptr.vmem [resolvable:$true] %s1493_s20 }
  0x1a   : > { %1727 = vmatprep.subr.bf16.mxu1 %v2010_v1  ;;  %v1875_v15 = vld [vmem:[%s491_s27] sm:$0xff]   ;;  %v1884_v18 = vld [vmem:[%s2491_s5 + $0x78] sm:$0xff]   ;;  %v1886_v20 = vld [vmem:[%s2491_s5 + $0x70] sm:$0xff]   ;;  %s1948_s23 = scalar_lea.vmem %s2447_s20, 16  ;;  %s1954_s27 = scalar_lea.vmem %s1953_s25, 32 }
  0x1b   : > { %1708 = vmatpush3.bf16.msra.mxu0 %v1868_v2  ;;  %v1883_v17 = vld [vmem:[%s2489_s3] sm:$0xff]   ;;  %v1885_v19 = vld [vmem:[%s2491_s5 + $0x38] sm:$0xff]   ;;  %v1887_v21 = vld [vmem:[%s2491_s5 + $0x30] sm:$0xff]   ;;  %p1949_p11 = scmp.ne.s32.totalorder %s2447_s20, %s1948_s23  ;;  %p1955_p0 = scmp.lt.s32.totalorder %s2447_s20, %s1953_s25 }
  0x1c   : > { %1709 = vmatprep.subr.bf16.mxu0 %v2010_v1  ;;  %v1554_v23 = vld [vmem:[%s2488_s2] ss:$0 sm:$0xff]  ;;  %v1888_v30 = vld [vmem:[%s2491_s5 + $0x68] sm:$0xff]   ;;  %v1892_v34 = vld [vmem:[%s2491_s5 + $0x58] sm:$0xff]   ;;  %p1956_p1 = scmp.lt.s32.totalorder %s1954_s27, %s1948_s23 }
  0x1d   : > { %1728 = vmatpush3.bf16.msra.mxu1 %v1877_v6  ;;  %v1889_v31 = vld [vmem:[%s2491_s5 + $0x28] sm:$0xff]   ;;  %v1890_v32 = vld [vmem:[%s2491_s5 + $0x60] sm:$0xff]   ;;  %v1893_v35 = vld [vmem:[%s2491_s5 + $0x18] sm:$0xff]   ;;  %p1950_p12 = pnand %p1949_p11, %p2132_p5 }
  0x1e   : > { %1729 = vmatprep.subr.bf16.mxu1 %v2010_v1  ;;  %v1891_v33 = vld [vmem:[%s2491_s5 + $0x20] sm:$0xff]   ;;  %v1894_v36 = vld [vmem:[%s2491_s5 + $0x50] sm:$0xff]   ;;  %v1896_v38 = vld [vmem:[%s2491_s5 + $0x48] sm:$0xff]   ;;  %p1957_p2 = por %p1956_p1, %p1955_p0 }
  0x1f   : > { %1710 = vmatpush3.bf16.msra.mxu0 %v1869_v3  ;;  %v1895_v37 = vld [vmem:[%s2491_s5 + $0x10] sm:$0xff]   ;;  %v1897_v39 = vld [vmem:[%s2491_s5 + $0x8] sm:$0xff]   ;;  %v1898_v40 = vld [vmem:[%s2491_s5 + $0x40] sm:$0xff]   ;;  %p1951_p13 = pneg %p1950_p12 }
  0x20   : > { %1711 = vmatprep.subr.bf16.mxu0 %v2010_v1  ;;  %v1899_v41 = vld [vmem:[%s2491_s5] sm:$0xff]   ;;  %v1900_v60 = vld [vmem:[%s2493_s7 + $0x38] sm:$0xff]   ;;  %v1901_v61 = vld [vmem:[%s2493_s7 + $0x30] sm:$0xff]  }
  0x21   : > { %1730 = vmatpush3.bf16.msra.mxu1 %v1878_v8  ;;  %v1564_v43 = vld [vmem:[%s2490_s4] ss:$0 sm:$0xff]  ;;  %v1902_v62 = vld [vmem:[%s2493_s7 + $0x28] sm:$0xff]   ;;  %v1904_v0 = vld [vmem:[%s2493_s7 + $0x18] sm:$0xff]   ;;  %p1958_p3 = pnand %p1957_p2, %p1951_p13 }
  0x22   : > { %1731 = vmatprep.subr.bf16.mxu1 %v2010_v1  ;;  %v1903_v63 = vld [vmem:[%s2493_s7 + $0x20] sm:$0xff]   ;;  %v1905_v2 = vld [vmem:[%s2493_s7 + $0x10] sm:$0xff]   ;;  %v1906_v3 = vld [vmem:[%s2493_s7 + $0x8] sm:$0xff]  }
  0x23   : > { %1712 = vmatpush3.bf16.msra.mxu0 %v1870_v5  ;;  %v1907_v4 = vld [vmem:[%s2493_s7] sm:$0xff]   ;;  %v1908_v5 = vld [vmem:[%s2495_s9 + $0x38] sm:$0xff]   ;;  %v1909_v6 = vld [vmem:[%s2495_s9 + $0x30] sm:$0xff]  }
  0x24   : > { %1713 = vmatprep.subr.bf16.mxu0 %v2010_v1  ;;  %v1911_v8 = vld [vmem:[%s2495_s9 + $0x20] sm:$0xff]  }
  0x25   : > { %1732 = vmatpush3.bf16.msra.mxu1 %v1879_v10 }
  0x26   : > { %1733 = vmatprep.subr.bf16.mxu1 %v2010_v1 }
  0x27   : > { %1714 = vmatpush3.bf16.msra.mxu0 %v1871_v7  ;;  %v1910_v7 = vld [vmem:[%s2495_s9 + $0x28] sm:$0xff]  }
  0x28   : > { %1715 = vmatprep.subr.bf16.mxu0 %v2010_v1 }
  0x29   : > { %1734 = vmatpush3.bf16.msra.mxu1 %v1880_v12 }
  0x2a   : > { %1735 = vmatprep.subr.bf16.mxu1 %v2010_v1 }
  0x2b   : > { %1716 = vmatpush3.bf16.msra.mxu0 %v1872_v9  ;;  %v1912_v9 = vld [vmem:[%s2495_s9 + $0x18] sm:$0xff]  }
  0x2c   : > { %1717 = vmatprep.subr.bf16.mxu0 %v2010_v1 }
  0x2d   : > { %1736 = vmatpush3.bf16.msra.mxu1 %v1881_v14 }
  0x2e   : > { %1737 = vmatprep.subr.bf16.mxu1 %v2010_v1 }
  0x2f   : > { %1718 = vmatpush3.bf16.msra.mxu0 %v1873_v11  ;;  %v1573_v11 = vld [vmem:[%s2492_s6] ss:$0 sm:$0xff] }
  0x30   : > { %1719 = vmatprep.subr.bf16.mxu0 %v2010_v1 }
  0x31   : > { %1738 = vmatpush3.bf16.msra.mxu1 %v1882_v16 }
  0x32   : > { %1739 = vmatprep.subr.bf16.mxu1 %v2010_v1 }
  0x33   : > { %1720 = vmatpush3.bf16.msra.mxu0 %v1874_v13 }
  0x34   : > { %1647 = vmatprep.subr.bf16.mxu0 %v1884_v18 }
  0x35   : > { %1740 = vmatpush3.bf16.msra.mxu1 %v1883_v17 }
  0x36   : > { %1722 = vmatmul.mubr.bf16.vlgmr.msra.gmra.mxu0 %v1875_v15  ;;  %1745 = vmatprep.subr.bf16.mxu1 %v2010_v1 }
  0x37   : > { %1648 = vmatpush3.bf16.msra.mxu0 %v1885_v19 }
  0x38   : > { %1649 = vmatprep.subr.bf16.mxu0 %v1886_v20 }
  0x3b   : > { %1650 = vmatpush3.bf16.msra.mxu0 %v1887_v21 }
  0x3c   : > { %1651 = vmatprep.subr.bf16.mxu0 %v1888_v30 }
  0x3f   : > { %1652 = vmatpush3.bf16.msra.mxu0 %v1889_v31 }
  0x40   : > { %1653 = vmatprep.subr.bf16.mxu0 %v1890_v32 }
  0x43   : > { %1654 = vmatpush3.bf16.msra.mxu0 %v1891_v33 }
  0x44   : > { %1655 = vmatprep.subr.bf16.mxu0 %v1892_v34 }
  0x47   : > { %1656 = vmatpush3.bf16.msra.mxu0 %v1893_v35 }
  0x48   : > { %1657 = vmatprep.subr.bf16.mxu0 %v1894_v36 }
  0x4b   : > { %1658 = vmatpush3.bf16.msra.mxu0 %v1895_v37 }
  0x4c   : > { %1659 = vmatprep.subr.bf16.mxu0 %v1896_v38 }
  0x4f   : > { %1660 = vmatpush3.bf16.msra.mxu0 %v1897_v39 }
  0x50   : > { %1661 = vmatprep.subr.bf16.mxu0 %v1898_v40 }
  0x53   : > { %1662 = vmatpush3.bf16.msra.mxu0 %v1899_v41 }
  0x54   : > { %1765 = vmatprep.subr.bf16.mxu0 %v2010_v1 }
  0xf6   : > { %v606_v22 = vpop.f32.mrf.mxu0 }
  0xf7   : > { %v2231_v26 = vadd.f32 %v1554_v23, %v606_v22 }
  0xf8   : > { %v1723_v24 = vpop.f32.mrf.mxu0 }
  0xfa   : > { %v609_v25 = vpop.f32.mrf.mxu0 }
  0xfb   : > { %v2233_v27 = vadd.f32 %v1554_v23, %v609_v25 }
  0xfc   : > { %v1724_v28 = vpop.f32.mrf.mxu0 }
  0xfd   : > { %v613_v29 = vpack.c.bf16 %v2233_v27, %v2231_v26 }
  0xff   : > { %1742 = vmatmul.mubr.bf16.vlgmr.msra.gmra.mxu1 %v613_v29 }
 0x100   : > { %1761 = vmatprep.mubr.msk.bf16.mxu1 %vm2011_vm0, %v2010_v1  ;;  %1746 = vmatpush3.bf16.msra.mxu1 %v1900_v60 }
 0x101   : > { %1747 = vmatprep.subr.bf16.mxu1 %v2010_v1 }
 0x104   : > { %1748 = vmatpush3.bf16.msra.mxu1 %v1901_v61 }
 0x105   : > { %1749 = vmatprep.subr.bf16.mxu1 %v2010_v1 }
 0x108   : > { %1750 = vmatpush3.bf16.msra.mxu1 %v1902_v62 }
 0x109   : > { %1751 = vmatprep.subr.bf16.mxu1 %v2010_v1 }
 0x10c   : > { %1752 = vmatpush3.bf16.msra.mxu1 %v1903_v63 }
 0x10d   : > { %1753 = vmatprep.subr.bf16.mxu1 %v2010_v1 }
 0x110   : > { %1754 = vmatpush3.bf16.msra.mxu1 %v1904_v0 }
 0x111   : > { %1755 = vmatprep.subr.bf16.mxu1 %v2010_v1 }
 0x114   : > { %1756 = vmatpush3.bf16.msra.mxu1 %v1905_v2 }
 0x115   : > { %1757 = vmatprep.subr.bf16.mxu1 %v2010_v1 }
 0x118   : > { %1758 = vmatpush3.bf16.msra.mxu1 %v1906_v3 }
 0x119   : > { %1759 = vmatprep.subr.bf16.mxu1 %v2010_v1 }
 0x11c   : > { %1760 = vmatpush3.bf16.msra.mxu1 %v1907_v4 }
 0x11d   : > { %1785 = vmatprep.subr.bf16.mxu1 %v2010_v1 }
 0x1bf   : > { %v719_v42 = vpop.f32.mrf.mxu1 }
 0x1c0   : > { %v720_v46 = vadd.f32 %v1564_v43, %v719_v42 }
 0x1c1   : > { %v1743_v44 = vpop.f32.mrf.mxu1 }
 0x1c3   : > { %v722_v45 = vpop.f32.mrf.mxu1 }
 0x1c4   : > { %v723_v47 = vadd.f32 %v1564_v43, %v722_v45 }
 0x1c5   : > { %v1744_v48 = vpop.f32.mrf.mxu1 }
 0x1c6   : > { %v726_v49 = vmax.f32 %v720_v46, %v723_v47  ;;  %v735_v59 = vpack.c.bf16 %v723_v47, %v720_v46 }
 0x1c8   : > { %v727_v50 = vrot.slane %v726_v49, 4 }
 0x1ca   : > { %v728_v51 = vmax.f32 %v726_v49, %v727_v50 }
 0x1cc   : > { %v729_v52 = vrot.slane %v728_v51, 2 }
 0x1ce   : > { %v730_v53 = vmax.f32 %v728_v51, %v729_v52 }
 0x1d0   : > { %v731_v54 = vrot.slane %v730_v53, 1 }
 0x1d2   : > { %v732_v55 = vmax.f32 %v730_v53, %v731_v54 }
 0x1d4   : > { %v734_v56 = vsub.f32 %v732_v55, %v723_v47  ;;  %v733_v57 = vsub.f32 %v732_v55, %v720_v46 }
 0x1d6   : > { %v736_v58 = vpack.c.bf16 %v734_v56, %v733_v57 }
 0x1d8   : > { %904 = vmatprep.mubr.bf16.mxu0 %v736_v58 }
 0x1d9   : > { %905 = vmatmul.mubr.bf16.vlgmr.msra.gmra.mxu0 %v735_v59  ;;  %v2012_v59 = vmov -1.0  }
 0x1da   : > { %1781 = vmatprep.mubr.msk.bf16.mxu0 %vm2011_vm0, %v2010_v1  ;;  %1766 = vmatpush3.bf16.msra.mxu0 %v1908_v5 }
 0x1db   : > { %1767 = vmatprep.subr.bf16.mxu0 %v2010_v1 }
 0x1de   : > { %1768 = vmatpush3.bf16.msra.mxu0 %v1909_v6 }
 0x1df   : > { %1769 = vmatprep.subr.bf16.mxu0 %v2010_v1 }
 0x1e2   : > { %1770 = vmatpush3.bf16.msra.mxu0 %v1910_v7 }
 0x1e3   : > { %1771 = vmatprep.subr.bf16.mxu0 %v2010_v1 }
 0x1e6   : > { %1772 = vmatpush3.bf16.msra.mxu0 %v1911_v8 }
 0x1e7   : > { %1773 = vmatprep.subr.bf16.mxu0 %v2010_v1 }
 0x1ea   : > { %1774 = vmatpush3.bf16.msra.mxu0 %v1912_v9 }
 0x1eb   : > { %1775 = vmatprep.subr.bf16.mxu0 %v2010_v1 }
 0x299   : > { %v1663_v10 = vpop.f32.mrf.mxu0 }
 0x29b   : > { %v1664_v12 = vpop.f32.mrf.mxu0 }
 0x29c   : > { %v1665_v13 = vadd.f32 %v1664_v12, %v1663_v10  ;;  %v1913_v10 = vld [vmem:[%s2495_s9 + $0x10] sm:$0xff]   ;;  %v1915_v12 = vld [vmem:[%s2495_s9] sm:$0xff]  }
 0x29d   : > { %v1666_v14 = vpop.f32.mrf.mxu0  ;;  %1776 = vmatpush3.bf16.msra.mxu0 %v1913_v10 }
 0x29e   : > { %v907_v15 = vadd.f32 %v1665_v13, %v1573_v11  ;;  %1777 = vmatprep.subr.bf16.mxu0 %v2010_v1  ;;  %v1590_v13 = vld [vmem:[%s2494_s8] ss:$0 sm:$0xff] }
 0x29f   : > { %v1667_v16 = vpop.f32.mrf.mxu0 }
 0x2a0   : > { %v915_v17 = vmul.f32 0.70710677, %v907_v15  ;;  %v1668_v18 = vadd.f32 %v1667_v16, %v1666_v14  ;;  %v913_v4 = vmul.f32 0.5, %v907_v15 }
 0x2a2   : > { %v921_v19 = vand.u32 2147483647, %v915_v17  ;;  %v910_v20 = vadd.f32 %v1668_v18, %v1573_v11  ;;  %vm917_vm1 = vcmp.ge.f32.partialorder %v915_v17, 0.0  ;;  %v1914_v11 = vld [vmem:[%s2495_s9 + $0x8] sm:$0xff]  }
 0x2a3   : > { %v919_v60 = vsel %vm917_vm1, 1.0, %v2012_v59  ;;  %1778 = vmatpush3.bf16.msra.mxu0 %v1914_v11 }
 0x2a4   : > { %v923_v21 = vmul.f32 0.3275911, %v921_v19  ;;  %v916_v22 = vmul.f32 0.70710677, %v910_v20  ;;  %v949_v29 = vsub.f32 0.0, %v921_v19  ;;  %v914_v5 = vmul.f32 0.5, %v910_v20  ;;  %1779 = vmatprep.subr.bf16.mxu0 %v2010_v1 }
 0x2a6   : > { %v925_v23 = vadd.f32 1.0, %v923_v21  ;;  %v922_v24 = vand.u32 2147483647, %v916_v22  ;;  %v951_v30 = vmul.f32 %v949_v29, %v921_v19  ;;  %vm918_vm2 = vcmp.ge.f32.partialorder %v916_v22, 0.0  ;;  %v1922_v29 = vld [vmem:[%s2497_s11 + $0x8] sm:$0xff]  }
 0x2a7   : > { %v920_v0 = vsel %vm918_vm2, 1.0, %v2012_v59  ;;  %1780 = vmatpush3.bf16.msra.mxu0 %v1915_v12 }
 0x2a8   : > { %1932 = vrcp.f32 %v925_v23  ;;  %v924_v25 = vmul.f32 0.3275911, %v922_v24  ;;  %v950_v31 = vsub.f32 0.0, %v922_v24  ;;  %v953_v34 = vmul.f32 1.442695, %v951_v30  ;;  %1805 = vmatprep.subr.bf16.mxu0 %v2010_v1  ;;  %v1916_v23 = vld [vmem:[%s2497_s11 + $0x38] sm:$0xff]  }
 0x2a9   : > { %v1923_v30 = vld [vmem:[%s2497_s11] sm:$0xff]  }
 0x2aa   : > { %v926_v28 = vadd.f32 1.0, %v924_v25  ;;  %v952_v35 = vmul.f32 %v950_v31, %v922_v24  ;;  %v1919_v24 = vld [vmem:[%s2497_s11 + $0x20] sm:$0xff]   ;;  %v1920_v25 = vld [vmem:[%s2497_s11 + $0x18] sm:$0xff]  }
 0x2ab   : > { %v1924_v31 = vld [vmem:[%s2499_s13 + $0x38] sm:$0xff]  }
 0x2ac   : > { %1934 = vrcp.f32 %v926_v28  ;;  %v955_v40 = vmul.f32 1.442695, %v952_v35  ;;  %v1921_v28 = vld [vmem:[%s2497_s11 + $0x10] sm:$0xff]  }
 0x2ad   : > { %1936 = vpow2.f32 %v953_v34 }
 0x2ae   : > { %1938 = vpow2.f32 %v955_v40 }
 0x2b5   : > { %v1933_v32 = vpop.eup %1932 }
 0x2b6   : > { %v931_v33 = vmul.f32 1.0614054, %v1933_v32 }
 0x2b8   : > { %v933_v36 = vadd.f32 -1.4531521, %v931_v33 }
 0x2b9   : > { %v1935_v37 = vpop.eup %1934 }
 0x2ba   : > { %v935_v38 = vmul.f32 %v1933_v32, %v933_v36  ;;  %v932_v39 = vmul.f32 1.0614054, %v1935_v37  ;;  %v1937_v53 = vpop.eup %1936 }
 0x2bb   : > { %v1939_v58 = vpop.eup %1938 }
 0x2bc   : > { %v937_v41 = vadd.f32 1.4214138, %v935_v38  ;;  %v934_v42 = vadd.f32 -1.4531521, %v932_v39 }
 0x2be   : > { %v939_v43 = vmul.f32 %v1933_v32, %v937_v41  ;;  %v936_v44 = vmul.f32 %v1935_v37, %v934_v42 }
 0x2c0   : > { %v941_v45 = vadd.f32 -0.28449672, %v939_v43  ;;  %v938_v46 = vadd.f32 1.4214138, %v936_v44 }
 0x2c2   : > { %v943_v47 = vmul.f32 %v1933_v32, %v941_v45  ;;  %v940_v48 = vmul.f32 %v1935_v37, %v938_v46 }
 0x2c4   : > { %v945_v49 = vadd.f32 0.2548296, %v943_v47  ;;  %v942_v50 = vadd.f32 -0.28449672, %v940_v48 }
 0x2c6   : > { %v947_v51 = vmul.f32 %v1933_v32, %v945_v49  ;;  %v944_v52 = vmul.f32 %v1935_v37, %v942_v50  ;;  %v1599_v32 = vld [vmem:[%s2496_s10] ss:$0 sm:$0xff] }
 0x2c8   : > { %v957_v54 = vmul.f32 %v1937_v53, %v947_v51  ;;  %v946_v55 = vadd.f32 0.2548296, %v944_v52 }
 0x2ca   : > { %v959_v56 = vsub.f32 1.0, %v957_v54  ;;  %v948_v57 = vmul.f32 %v1935_v37, %v946_v55 }
 0x2cc   : > { %v961_v61 = vmul.f32 %v959_v56, %v919_v60  ;;  %v958_v62 = vmul.f32 %v1939_v58, %v948_v57 }
 0x2ce   : > { %v960_v63 = vsub.f32 1.0, %v958_v62  ;;  %v963_v2 = vadd.f32 1.0, %v961_v61 }
 0x2d0   : > { %v962_v3 = vmul.f32 %v960_v63, %v920_v0  ;;  %v965_v7 = vmul.f32 %v963_v2, %v913_v4 }
 0x2d2   : > { %v964_v6 = vadd.f32 1.0, %v962_v3 }
 0x2d4   : > { %v966_v8 = vmul.f32 %v964_v6, %v914_v5 }
 0x2d6   : > { %v967_v9 = vpack.c.bf16 %v966_v8, %v965_v7 }
 0x2d8   : > { %1762 = vmatmul.mubr.bf16.vlgmr.msra.gmra.mxu1 %v967_v9 }
 0x2d9   : > { %1801 = vmatprep.mubr.msk.bf16.mxu1 %vm2011_vm0, %v2010_v1  ;;  %1786 = vmatpush3.bf16.msra.mxu1 %v1916_v23 }
 0x2da   : > { %1787 = vmatprep.subr.bf16.mxu1 %v2010_v1 }
 0x398   : > { %v1073_v14 = vpop.f32.mrf.mxu1 }
 0x399   : > { %v1074_v16 = vadd.f32 %v1590_v13, %v1073_v14 }
 0x39a   : > { %v1763_v15 = vpop.f32.mrf.mxu1 }
 0x39b   : > { %v2356_v20 = vadd.f32 %v1074_v16, %v2231_v26  ;;  %v1917_v26 = vld [vmem:[%s2497_s11 + $0x30] sm:$0xff]  }
 0x39c   : > { %v1076_v17 = vpop.f32.mrf.mxu1  ;;  %1788 = vmatpush3.bf16.msra.mxu1 %v1917_v26 }
 0x39d   : > { %v1077_v18 = vadd.f32 %v1590_v13, %v1076_v17  ;;  %1789 = vmatprep.subr.bf16.mxu1 %v2010_v1 }
 0x39e   : > { %v1764_v19 = vpop.f32.mrf.mxu1 }
 0x39f   : > { %v2359_v21 = vadd.f32 %v1077_v18, %v2233_v27  ;;  %v1918_v27 = vld [vmem:[%s2497_s11 + $0x28] sm:$0xff]  }
 0x3a0   : > { %1790 = vmatpush3.bf16.msra.mxu1 %v1918_v27 }
 0x3a1   : > { %v1082_v22 = vpack.c.bf16 %v2359_v21, %v2356_v20  ;;  %1791 = vmatprep.subr.bf16.mxu1 %v2010_v1 }
 0x3a3   : > { %1782 = vmatmul.mubr.bf16.vlgmr.msra.gmra.mxu0 %v1082_v22 }
 0x3a4   : > { %1821 = vmatprep.mubr.msk.bf16.mxu0 %vm2011_vm0, %v2010_v1  ;;  %1792 = vmatpush3.bf16.msra.mxu1 %v1919_v24 }
 0x3a5   : > { %1793 = vmatprep.subr.bf16.mxu1 %v2010_v1  ;;  %1806 = vmatpush3.bf16.msra.mxu0 %v1924_v31  ;;  %v1927_v31 = vld [vmem:[%s2499_s13 + $0x20] sm:$0xff]  }
 0x3a6   : > { %1807 = vmatprep.subr.bf16.mxu0 %v2010_v1 }
 0x3a8   : > { %1794 = vmatpush3.bf16.msra.mxu1 %v1920_v25 }
 0x3a9   : > { %1795 = vmatprep.subr.bf16.mxu1 %v2010_v1 }
 0x3ac   : > { %1796 = vmatpush3.bf16.msra.mxu1 %v1921_v28 }
 0x3ad   : > { %1797 = vmatprep.subr.bf16.mxu1 %v2010_v1 }
 0x3b0   : > { %1798 = vmatpush3.bf16.msra.mxu1 %v1922_v29 }
 0x3b1   : > { %1799 = vmatprep.subr.bf16.mxu1 %v2010_v1 }
 0x3b4   : > { %1800 = vmatpush3.bf16.msra.mxu1 %v1923_v30  ;;  %v1925_v30 = vld [vmem:[%s2499_s13 + $0x30] sm:$0xff]  }
 0x3b5   : > { %1808 = vmatpush3.bf16.msra.mxu0 %v1925_v30 }
 0x3b6   : > { %1809 = vmatprep.subr.bf16.mxu0 %v2010_v1 }
 0x463   : > { %v1188_v33 = vpop.f32.mrf.mxu0 }
 0x464   : > { %v1189_v34 = vadd.f32 %v1599_v32, %v1188_v33  ;;  %v1929_v33 = vld [vmem:[%s2499_s13 + $0x10] sm:$0xff]  }
 0x465   : > { %v1783_v35 = vpop.f32.mrf.mxu0 }
 0x466   : > { %v1197_v36 = vmul.f32 0.70710677, %v1189_v34  ;;  %v1195_v26 = vmul.f32 0.5, %v1189_v34  ;;  %v1930_v34 = vld [vmem:[%s2499_s13 + $0x8] sm:$0xff]   ;;  %v1931_v35 = vld [vmem:[%s2499_s13] sm:$0xff]  }
 0x467   : > { %v1191_v37 = vpop.f32.mrf.mxu0 }
 0x468   : > { %v1203_v38 = vand.u32 2147483647, %v1197_v36  ;;  %v1192_v39 = vadd.f32 %v1599_v32, %v1191_v37  ;;  %vm1199_vm3 = vcmp.ge.f32.partialorder %v1197_v36, 0.0  ;;  %v1928_v32 = vld [vmem:[%s2499_s13 + $0x18] sm:$0xff]   ;;  %v1608_v36 = vld [vmem:[%s2498_s12] ss:$0 sm:$0xff] }
 0x469   : > { %v1784_v40 = vpop.f32.mrf.mxu0  ;;  %v1201_v15 = vsel %vm1199_vm3, 1.0, %v2012_v59 }
 0x46a   : > { %v1205_v41 = vmul.f32 0.3275911, %v1203_v38  ;;  %v1198_v42 = vmul.f32 0.70710677, %v1192_v39  ;;  %v1231_v47 = vsub.f32 0.0, %v1203_v38  ;;  %v1196_v27 = vmul.f32 0.5, %v1192_v39 }
 0x46c   : > { %v1207_v43 = vadd.f32 1.0, %v1205_v41  ;;  %v1204_v44 = vand.u32 2147483647, %v1198_v42  ;;  %v1233_v48 = vmul.f32 %v1231_v47, %v1203_v38  ;;  %vm1200_vm4 = vcmp.ge.f32.partialorder %v1198_v42, 0.0 }
 0x46d   : > { %v1202_v19 = vsel %vm1200_vm4, 1.0, %v2012_v59  ;;  %v1926_v59 = vld [vmem:[%s2499_s13 + $0x28] sm:$0xff]  }
 0x46e   : > { %1940 = vrcp.f32 %v1207_v43  ;;  %v1206_v45 = vmul.f32 0.3275911, %v1204_v44  ;;  %v1232_v49 = vsub.f32 0.0, %v1204_v44  ;;  %v1235_v52 = vmul.f32 1.442695, %v1233_v48  ;;  %1810 = vmatpush3.bf16.msra.mxu0 %v1926_v59 }
 0x46f   : > { %1811 = vmatprep.subr.bf16.mxu0 %v2010_v1 }
 0x470   : > { %v1208_v46 = vadd.f32 1.0, %v1206_v45  ;;  %v1234_v53 = vmul.f32 %v1232_v49, %v1204_v44 }
 0x472   : > { %1942 = vrcp.f32 %v1208_v46  ;;  %v1237_v58 = vmul.f32 1.442695, %v1234_v53  ;;  %1812 = vmatpush3.bf16.msra.mxu0 %v1927_v31  ;;  %v1390_v53 = vld [vmem:[%s2500_s14] sm:$0x1] }
 0x473   : > { %1944 = vpow2.f32 %v1235_v52  ;;  %1813 = vmatprep.subr.bf16.mxu0 %v2010_v1 }
 0x474   : > { %1946 = vpow2.f32 %v1237_v58 }
 0x476   : > { %1814 = vmatpush3.bf16.msra.mxu0 %v1928_v32 }
 0x477   : > { %1815 = vmatprep.subr.bf16.mxu0 %v2010_v1 }
 0x47a   : > { %1816 = vmatpush3.bf16.msra.mxu0 %v1929_v33 }
 0x47b   : > { %v1941_v50 = vpop.eup %1940  ;;  %1817 = vmatprep.subr.bf16.mxu0 %v2010_v1 }
 0x47c   : > { %v1213_v51 = vmul.f32 1.0614054, %v1941_v50 }
 0x47e   : > { %v1215_v54 = vadd.f32 -1.4531521, %v1213_v51  ;;  %1818 = vmatpush3.bf16.msra.mxu0 %v1930_v34 }
 0x47f   : > { %v1943_v55 = vpop.eup %1942  ;;  %1819 = vmatprep.subr.bf16.mxu0 %v2010_v1 }
 0x480   : > { %v1217_v56 = vmul.f32 %v1941_v50, %v1215_v54  ;;  %v1214_v57 = vmul.f32 1.0614054, %v1943_v55  ;;  %v1945_v9 = vpop.eup %1944 }
 0x481   : > { %v1947_v14 = vpop.eup %1946 }
 0x482   : > { %v1219_v60 = vadd.f32 1.4214138, %v1217_v56  ;;  %v1216_v61 = vadd.f32 -1.4531521, %v1214_v57  ;;  %1820 = vmatpush3.bf16.msra.mxu0 %v1931_v35 }
 0x484   : > { %v1221_v62 = vmul.f32 %v1941_v50, %v1219_v60  ;;  %v1218_v63 = vmul.f32 %v1943_v55, %v1216_v61 }
 0x486   : > { %v1223_v0 = vadd.f32 -0.28449672, %v1221_v62  ;;  %v1220_v2 = vadd.f32 1.4214138, %v1218_v63 }
 0x488   : > { %v1225_v3 = vmul.f32 %v1941_v50, %v1223_v0  ;;  %v1222_v4 = vmul.f32 %v1943_v55, %v1220_v2 }
 0x48a   : > { %v1227_v5 = vadd.f32 0.2548296, %v1225_v3  ;;  %v1224_v6 = vadd.f32 -0.28449672, %v1222_v4 }
 0x48c   : > { %v1229_v7 = vmul.f32 %v1941_v50, %v1227_v5  ;;  %v1226_v8 = vmul.f32 %v1943_v55, %v1224_v6 }
 0x48e   : > { %v1239_v10 = vmul.f32 %v1945_v9, %v1229_v7  ;;  %v1228_v11 = vadd.f32 0.2548296, %v1226_v8 }
 0x490   : > { %v1241_v12 = vsub.f32 1.0, %v1239_v10  ;;  %v1230_v13 = vmul.f32 %v1943_v55, %v1228_v11 }
 0x492   : > { %v1243_v16 = vmul.f32 %v1241_v12, %v1201_v15  ;;  %v1240_v17 = vmul.f32 %v1947_v14, %v1230_v13 }
 0x494   : > { %v1242_v18 = vsub.f32 1.0, %v1240_v17  ;;  %v1245_v22 = vadd.f32 1.0, %v1243_v16 }
 0x496   : > { %v1244_v23 = vmul.f32 %v1242_v18, %v1202_v19  ;;  %v1247_v25 = vmul.f32 %v1245_v22, %v1195_v26 }
 0x498   : > { %v1246_v24 = vadd.f32 1.0, %v1244_v23 }
 0x49a   : > { %v1248_v28 = vmul.f32 %v1246_v24, %v1196_v27 }
 0x49c   : > { %v1249_v29 = vpack.c.bf16 %v1248_v28, %v1247_v25 }
 0x49e   : > { %1802 = vmatmul.mubr.bf16.vlgmr.msra.gmra.mxu1 %v1249_v29 }
 0x55e   : > { %v1355_v37 = vpop.f32.mrf.mxu1 }
 0x55f   : > { %v1356_v39 = vadd.f32 %v1608_v36, %v1355_v37 }
 0x560   : > { %v1803_v38 = vpop.f32.mrf.mxu1 }
 0x561   : > { %v1362_v43 = vadd.f32 %v1356_v39, %v2356_v20 }
 0x562   : > { %v1358_v40 = vpop.f32.mrf.mxu1 }
 0x563   : > { %v1359_v41 = vadd.f32 %v1608_v36, %v1358_v40 }
 0x564   : > { %v1804_v42 = vpop.f32.mrf.mxu1 }
 0x565   : > { %v1363_v44 = vadd.f32 %v1359_v41, %v2359_v21 }
 0x567   : > { %v1364_v45 = vadd.f32 %v1363_v44, %v1362_v43 }
 0x569   : > { %v1365_v46 = vrot.slane %v1364_v45, 4 }
 0x56b   : > { %v1366_v1 = vadd.f32 %v1365_v46, %v1364_v45 }
 0x56d   : > { %v1367_v47 = vrot.slane %v1366_v1, 2 }
 0x56f   : > { %v1368_v48 = vadd.f32 %v1367_v47, %v1366_v1 }
 0x571   : > { %v1369_v49 = vrot.slane %v1368_v48, 1 }
 0x573   : > { %v1370_v50 = vadd.f32 %v1369_v49, %v1368_v48 }
 0x575   : > { %v1372_v51 = vmul.f32 0.0625, %v1370_v50 }
 0x577   : > { %v1373_v52 = vpack.c.bf16 %v1372_v51, %v1372_v51 }
 0x579   : > { %1822 = vmatmul.mubr.bf16.vlgmr.msra.gmra.mxu0 %v1373_v52 }
 0x639   : > { %v1473_v20 = vpop.f32.mrf.mxu0 }
 0x63a   : > { %v1474_v21 = vadd.f32 %v1473_v20, %v1390_v53 }
 0x63b   : > { %v1823_v54 = vpop.f32.mrf.mxu0 }
 0x63c   : > { %1479 = vst [vmem:[%s486_s16] sm:$0x1] %v1474_v21 }
 0x63d   : > { %v1476_v55 = vpop.f32.mrf.mxu0 }
 0x63e   : > { %1961 = shalt.err (!%p1958_p3)
}
 0x63f   : > { %s1962_s30 = scalar_lea.hbm %s2445_s29, 16  ;;  %s1966_s18 = scalar_lea.hbm %s2501_s15, 32 }
 0x640   : > { %p1963_p4 = scmp.ne.s32.totalorder %s2445_s29, %s1962_s30  ;;  %p1967_p9 = scmp.lt.s32.totalorder %s2445_s29, %s2501_s15 }
 0x641   : > { %p1968_p10 = scmp.lt.s32.totalorder %s1966_s18, %s1962_s30 }
 0x642   : > { %p1964_p7 = pnand %p1963_p4, %p2132_p5 }
 0x643   : > { %p1969_p11 = por %p1968_p10, %p1967_p9 }
 0x644   : > { %p1965_p8 = pneg %p1964_p7 }
 0x646   : > { %p1970_p12 = pnand %p1969_p11, %p1965_p8 }
 0x648   : > { %1973 = shalt.err (!%p1970_p12)
}
 0x649   : > { %1825 = dma.vmem_to_hbm [thread:$0]  (%p2132_p5), %s2447_s20, 16, %s2445_s29, %s1481_s17   ;;  %v1824_v56 = vpop.f32.mrf.mxu0 }
 0x64a PF: > { %s2514_s23 = sld [smem:[#allocation5_spill]]  ;;  %p1831_p13 = scmp.ge.s32.totalorder %s2008_s21, 2 }
 0x64c   : > { %p1828_p0 = pnand %p1831_p13, %p2136_p6 }
 0x64e   : > { %p1829_p1 = pneg %p1828_p0 }
 0x650   : > { %s1505_s27 = sand.u32 1, %s2514_s23  }
 0x651   : > { %s1506_s26 = scalar_lea.sflag [#allocation3], %s1505_s27 }
 0x652   : > { %1991 = dma.done.wait (%p1829_p1), %s1506_s26, 16  }
 0x653   : > { %1993 = vsyncadd (%p1829_p1), %s1506_s26, 4294967280  ;;  %s2516_s21 = sld [smem:[#allocation7_spill]]  ;;  %s2519_s18 = smov %s2000_s19 }
 0x654   : > { %s2517_s30 = sld [smem:[#allocation6_spill]] }
 0x655   : > { %s2518_s20 = sld [smem:[#allocation8_spill]] }
 0x659   : > { %p25_p2 = scmp.ge.s32.totalorder %s2516_s21, 4  }
 0x65a   : > { %s2520_s19 = smov %s2517_s30 }
 0x65b   :  { %27 = sbr.rel (!%p25_p2) target bundleno = 3 (0x3), region = 115 }
 0x660   :  { %1510 = vsyncpa [#allocation3], 1 }
 0x661   :  { %1512 = vsyncpa [#allocation3 + $0x1], 1 }

</bundles_post_ra>
